<compile_context>
chip_gen: v5e
topology: v5e:2x2
jax: 0.10.0
libtpu: 0.0.40
codegen_flags: <defaults>
</compile_context>

<pallas_src>
import math
import functools

import jax
import jax.numpy as jnp
import numpy as np
from jax.experimental import pallas as pl
from jax.experimental.pallas import tpu as pltpu


# ----------------------------------------------------------------------------
# Fused kernel: per-edge activation + online softmax + target aggregation
# ----------------------------------------------------------------------------
def gat_fused_kernel(ze_ref, mtgt_ref, o_ref, acc_ref, m_ref, *, d_o, eps):
    k = pl.program_id(1)

    @pl.when(k == 0)
    def _():
        acc_ref[...] = jnp.zeros(acc_ref.shape, acc_ref.dtype)
        m_ref[...] = jnp.full(m_ref.shape, -jnp.inf, m_ref.dtype)

    z = ze_ref[...]                                        # (te, d_pad) f32
    te, d_pad = z.shape
    col = jax.lax.broadcasted_iota(jnp.int32, (te, d_pad), 1)
    is_y = col < d_o
    is_a = col == d_o

    # attention logit column, extracted lane-dense via masked XLU reduce
    a_col = jnp.sum(jnp.where(is_a, z, 0.0), axis=1, keepdims=True)   # (te, 1)

    # online softmax: running max + rescale of the accumulator
    m_old = m_ref[...]                                     # (1, 1)
    m_new = jnp.maximum(m_old, jnp.max(a_col, keepdims=True))
    m_ref[...] = m_new
    scale = jnp.exp(m_old - m_new)                         # exp(-inf)=0 on first tile
    a_exp = jnp.exp(a_col - m_new)                         # (te, 1)

    # p = [relu(y) * a_exp | a_exp | 0 ... 0]  in one full-width multiply
    base = jnp.where(is_y, jnp.maximum(z, 0.0), is_a.astype(jnp.float32))
    p = base * a_exp                                       # (te, d_pad)

    m_blk = mtgt_ref[...].astype(jnp.float32)              # (tn, te)  bf16 -> f32 (exact 0/1)
    acc_ref[...] = scale * acc_ref[...] + jnp.dot(
        m_blk, p, preferred_element_type=jnp.float32)

    @pl.when(k == pl.num_programs(1) - 1)
    def _():
        acc = acc_ref[...]
        num = acc[:, :d_o]
        den = acc[:, d_o:d_o + 1]
        o_ref[...] = (num / (den + eps)).astype(o_ref.dtype)


# ----------------------------------------------------------------------------
# Wrapper
# ----------------------------------------------------------------------------
def _round_up(x, m):
    return (x + m - 1) // m * m


def gat_layer_edge_softmax(x, src, tgt, Mtgt, Wf, bf, Ww, bw,
                           *, eps=1e-6, te=512, tn_max=512):
    N, d_i = x.shape
    E = int(src.shape[0])
    d_o = Wf.shape[1]

    # --- node-side fused projection (small N x d_i matmuls, JAX glue) --------
    # W = [Wf | Ww] split into src / tgt halves; bias folded into the tgt half.
    W_src = jnp.concatenate([Wf[:d_i], Ww[:d_i]], axis=1)          # (d_i, d_o+1)
    W_tgt = jnp.concatenate([Wf[d_i:], Ww[d_i:]], axis=1)          # (d_i, d_o+1)
    bias = jnp.concatenate([bf, bw], axis=1)                       # (1, d_o+1)

    d_pad = _round_up(d_o + 1, 128)
    pad_c = d_pad - (d_o + 1)
    if pad_c:
        W_src = jnp.pad(W_src, ((0, 0), (0, pad_c)))
        W_tgt = jnp.pad(W_tgt, ((0, 0), (0, pad_c)))
        bias = jnp.pad(bias, ((0, 0), (0, pad_c)))

    Z_src = x @ W_src                                              # (N, d_pad)
    Z_tgt = x @ W_tgt + bias                                       # (N, d_pad)

    # per-edge pre-activation slab  [y_pre | a | 0...]
    # TODO(synk): pull this row gather into the kernel with scalar-prefetch
    # pl.Element indexing to avoid materializing (E, d_pad) in HBM.
    ZE = Z_src[src] + Z_tgt[tgt]                                   # (E, d_pad) f32

    # --- padding / tiling -----------------------------------------------------
    te_eff = min(te, _round_up(E, 128))
    E_pad = _round_up(E, te_eff)

    N_pad = _round_up(N, 16)                                       # bf16 sublane packing
    if N_pad > tn_max:
        N_pad = _round_up(N, tn_max)
        tn = tn_max
    else:
        tn = N_pad

    Mtgt_p = Mtgt
    if E_pad > E:
        pad_rows = jnp.zeros((E_pad - E, d_pad), ZE.dtype).at[:, d_o].set(-1e30)
        ZE = jnp.concatenate([ZE, pad_rows], axis=0)
        Mtgt_p = jnp.pad(Mtgt_p, ((0, 0), (0, E_pad - E)))
    if N_pad > N:
        Mtgt_p = jnp.pad(Mtgt_p, ((0, N_pad - N), (0, 0)))
    Mtgt_b16 = Mtgt_p.astype(jnp.bfloat16)                         # 0/1 mask: exact in bf16

    grid = (N_pad // tn, E_pad // te_eff)

    o = pl.pallas_call(
        functools.partial(gat_fused_kernel, d_o=d_o, eps=eps),
        out_shape=jax.ShapeDtypeStruct((N_pad, d_o), jnp.float32),
        grid_spec=pltpu.PrefetchScalarGridSpec(
            num_scalar_prefetch=0,
            grid=grid,
            in_specs=[
                pl.BlockSpec((te_eff, d_pad), lambda n, k: (k, 0)),   # ZE slab
                pl.BlockSpec((tn, te_eff), lambda n, k: (n, k)),      # Mtgt (bf16)
            ],
            out_specs=pl.BlockSpec((tn, d_o), lambda n, k: (n, 0)),
            scratch_shapes=[
                pltpu.VMEM((tn, d_pad), jnp.float32),   # fused num|den accumulator
                pltpu.VMEM((1, 1), jnp.float32),        # running max
            ],
        ),
        compiler_params=pltpu.CompilerParams(
            dimension_semantics=("parallel", "arbitrary")),
    )(ZE, Mtgt_b16)

    return o[:N]


# ----------------------------------------------------------------------------
# Pure-JAX reference (mirrors the PyTorch forward)
# ----------------------------------------------------------------------------
def ref_forward(x, src, tgt, Mtgt, Wf, bf, Ww, bw, eps=1e-6):
    h = jnp.concatenate([x[src], x[tgt]], axis=1)
    y = jnp.maximum(h @ Wf + bf, 0.0)
    a = h @ Ww + bw
    a_base = jnp.max(a, axis=0, keepdims=True)
    a_exp = jnp.exp(a - a_base)
    a_sum = Mtgt @ a_exp + eps
    return (Mtgt @ (y * a_exp)) / a_sum


if __name__ == "__main__":
    # Small problem consistent with the module: N nodes, E edges.
    N, d_i, d_o, E = 64, 16, 64, 1024
    eps = 1e-6

    key = jax.random.PRNGKey(0)
    kx, ks, kt, k1, k2, k3, k4 = jax.random.split(key, 7)

    x = jax.random.normal(kx, (N, d_i), dtype=jnp.float32)
    src = jax.random.randint(ks, (E,), 0, N)
    tgt = jax.random.randint(kt, (E,), 0, N)

    # Mtgt[n, e] = 1 iff edge e targets node n  (N, E)
    Mtgt = (tgt[None, :] == jnp.arange(N)[:, None]).astype(jnp.float32)

    # Deterministic parameter init (xavier_uniform for weights, PyTorch-default
    # uniform(-1/sqrt(fan_in), 1/sqrt(fan_in)) for biases).
    two_di = 2 * d_i
    bnd_f = math.sqrt(6.0 / (two_di + d_o))
    bnd_w = math.sqrt(6.0 / (two_di + 1))
    bnd_b = 1.0 / math.sqrt(two_di)
    Wf = jax.random.uniform(k1, (two_di, d_o), jnp.float32, -bnd_f, bnd_f)
    bf = jax.random.uniform(k2, (1, d_o), jnp.float32, -bnd_b, bnd_b)
    Ww = jax.random.uniform(k3, (two_di, 1), jnp.float32, -bnd_w, bnd_w)
    bw = jax.random.uniform(k4, (1, 1), jnp.float32, -bnd_b, bnd_b)

    o = gat_layer_edge_softmax(x, src, tgt, Mtgt, Wf, bf, Ww, bw, eps=eps)
    o = jax.block_until_ready(o)

    o_ref = ref_forward(x, src, tgt, Mtgt, Wf, bf, Ww, bw, eps=eps)
    np.testing.assert_allclose(np.asarray(o), np.asarray(o_ref),
                               rtol=1e-4, atol=1e-4)

    print("KERNEL_OK")
</pallas_src>

<mosaic_0001>
module attributes {stable_mosaic.version = 11 : i64} {
  func.func @gat_fused_kernel(%arg0: i32, %arg1: i32, %arg2: memref<512x128xf32, #tpu.memory_space<vmem>>, %arg3: memref<64x512xbf16, #tpu.memory_space<vmem>>, %arg4: memref<64x64xf32, #tpu.memory_space<vmem>>, %arg5: memref<64x128xf32, #tpu.memory_space<vmem>>, %arg6: memref<1x1xf32, #tpu.memory_space<vmem>>) attributes {dimension_semantics = [#tpu.dimension_semantics<parallel>, #tpu.dimension_semantics<arbitrary>], iteration_bounds = array<i64: 1, 2>, scalar_prefetch = 0 : i64, scratch_operands = 2 : i64, tpu.core_type = #tpu.core_type<tc>, window_params = [{transform_indices = @transform_0, window_bounds = array<i64: 512, 128>}, {transform_indices = @transform_1, window_bounds = array<i64: 64, 512>}, {transform_indices = @transform_2, window_bounds = array<i64: 64, 64>}]} {
    %c0_i32 = arith.constant 0 : i32
    %0 = arith.cmpi eq, %arg1, %c0_i32 : i32
    %1 = arith.extui %0 : i1 to i32
    %c0_i32_0 = arith.constant 0 : i32
    %2 = arith.cmpi ne, %1, %c0_i32_0 : i32
    scf.if %2 {
      %cst_18 = arith.constant 0.000000e+00 : f32
      %44 = vector.broadcast %cst_18 : f32 to vector<64x128xf32>
      %c0_19 = arith.constant 0 : index
      %c0_20 = arith.constant 0 : index
      %45 = vector.load %arg5[%c0_19, %c0_20] : memref<64x128xf32, #tpu.memory_space<vmem>>, vector<64x128xf32>
      tpu.vector_store %arg5[%c0_19, %c0_20], %44 {strides = array<i32>} : memref<64x128xf32, #tpu.memory_space<vmem>>, vector<64x128xf32>,
      %cst_21 = arith.constant 0xFF800000 : f32
      %46 = vector.broadcast %cst_21 : f32 to vector<1x1xf32>
      %c0_22 = arith.constant 0 : index
      %c0_23 = arith.constant 0 : index
      %47 = vector.load %arg6[%c0_22, %c0_23] : memref<1x1xf32, #tpu.memory_space<vmem>>, vector<1x1xf32>
      tpu.vector_store %arg6[%c0_22, %c0_23], %46 {strides = array<i32>} : memref<1x1xf32, #tpu.memory_space<vmem>>, vector<1x1xf32>,
    } else {
    }
    %c0 = arith.constant 0 : index
    %c0_1 = arith.constant 0 : index
    %3 = vector.load %arg2[%c0, %c0_1] : memref<512x128xf32, #tpu.memory_space<vmem>>, vector<512x128xf32>
    %4 = tpu.iota {dimensions = array<i32: 1>} : vector<512x128xi32>
    %c64_i32 = arith.constant 64 : i32
    %5 = vector.broadcast %c64_i32 : i32 to vector<512x128xi32>
    %6 = arith.cmpi slt, %4, %5 : vector<512x128xi32>
    %c64_i32_2 = arith.constant 64 : i32
    %7 = vector.broadcast %c64_i32_2 : i32 to vector<512x128xi32>
    %8 = arith.cmpi eq, %4, %7 : vector<512x128xi32>
    %cst = arith.constant 0.000000e+00 : f32
    %9 = vector.broadcast %cst : f32 to vector<512x128xf32>
    %10 = arith.select %8, %3, %9 : vector<512x128xi1>, vector<512x128xf32>
    %cst_3 = arith.constant dense<0.000000e+00> : vector<512xf32>
    %11 = vector.multi_reduction <add>, %10, %cst_3 [1] : vector<512x128xf32> to vector<512xf32>
    %12 = vector.shape_cast %11 : vector<512xf32> to vector<512x1xf32>
    %c0_4 = arith.constant 0 : index
    %c0_5 = arith.constant 0 : index
    %13 = vector.load %arg6[%c0_4, %c0_5] : memref<1x1xf32, #tpu.memory_space<vmem>>, vector<1x1xf32>
    %14 = vector.shape_cast %12 : vector<512x1xf32> to vector<1x512x1xf32>
    %cst_6 = arith.constant dense<0xFF800000> : vector<1xf32>
    %15 = vector.multi_reduction <maximumf>, %14, %cst_6 [1, 2] : vector<1x512x1xf32> to vector<1xf32>
    %16 = vector.shape_cast %15 : vector<1xf32> to vector<1x1x1xf32>
    %17 = vector.extract %16[0, 0, 0] : f32 from vector<1x1x1xf32>
    %18 = vector.broadcast %17 : f32 to vector<1x1xf32>
    %19 = arith.maximumf %13, %18 : vector<1x1xf32>
    %c0_7 = arith.constant 0 : index
    %c0_8 = arith.constant 0 : index
    %20 = vector.load %arg6[%c0_7, %c0_8] : memref<1x1xf32, #tpu.memory_space<vmem>>, vector<1x1xf32>
    tpu.vector_store %arg6[%c0_7, %c0_8], %19 {strides = array<i32>} : memref<1x1xf32, #tpu.memory_space<vmem>>, vector<1x1xf32>,
    %21 = arith.subf %13, %19 : vector<1x1xf32>
    %22 = math.exp %21 : vector<1x1xf32>
    %23 = vector.broadcast %19 : vector<1x1xf32> to vector<512x1xf32>
    %24 = arith.subf %12, %23 : vector<512x1xf32>
    %25 = math.exp %24 : vector<512x1xf32>
    %cst_9 = arith.constant 0.000000e+00 : f32
    %26 = vector.broadcast %cst_9 : f32 to vector<512x128xf32>
    %27 = arith.maximumf %3, %26 : vector<512x128xf32>
    %28 = arith.extui %8 : vector<512x128xi1> to vector<512x128xi32>
    %29 = arith.sitofp %28 : vector<512x128xi32> to vector<512x128xf32>
    %30 = arith.select %6, %27, %29 : vector<512x128xi1>, vector<512x128xf32>
    %31 = vector.broadcast %25 : vector<512x1xf32> to vector<512x128xf32>
    %32 = arith.mulf %30, %31 : vector<512x128xf32>
    %c0_10 = arith.constant 0 : index
    %c0_11 = arith.constant 0 : index
    %33 = vector.load %arg3[%c0_10, %c0_11] : memref<64x512xbf16, #tpu.memory_space<vmem>>, vector<64x512xbf16>
    %34 = arith.extf %33 : vector<64x512xbf16> to vector<64x512xf32>
    %c0_12 = arith.constant 0 : index
    %c0_13 = arith.constant 0 : index
    %35 = vector.load %arg5[%c0_12, %c0_13] : memref<64x128xf32, #tpu.memory_space<vmem>>, vector<64x128xf32>
    %36 = vector.broadcast %22 : vector<1x1xf32> to vector<64x128xf32>
    %37 = arith.mulf %36, %35 : vector<64x128xf32>
    %cst_14 = arith.constant dense<0.000000e+00> : vector<64x128xf32>
    %38 = tpu.matmul %34, %32, %cst_14 {dimension_numbers = #tpu.dot_dimension_numbers<[1], [0], [0], [1], [0, 0, 1, 1], [], []>} : vector<64x512xf32>, vector<512x128xf32>, vector<64x128xf32> -> vector<64x128xf32>
    %39 = arith.addf %37, %38 : vector<64x128xf32>
    %c0_15 = arith.constant 0 : index
    %c0_16 = arith.constant 0 : index
    %40 = vector.load %arg5[%c0_15, %c0_16] : memref<64x128xf32, #tpu.memory_space<vmem>>, vector<64x128xf32>
    tpu.vector_store %arg5[%c0_15, %c0_16], %39 {strides = array<i32>} : memref<64x128xf32, #tpu.memory_space<vmem>>, vector<64x128xf32>,
    %c1_i32 = arith.constant 1 : i32
    %41 = arith.cmpi eq, %arg1, %c1_i32 : i32
    %42 = arith.extui %41 : i1 to i32
    %c0_i32_17 = arith.constant 0 : i32
    %43 = arith.cmpi ne, %42, %c0_i32_17 : i32
    scf.if %43 {
      %c0_18 = arith.constant 0 : index
      %c0_19 = arith.constant 0 : index
      %44 = vector.load %arg5[%c0_18, %c0_19] : memref<64x128xf32, #tpu.memory_space<vmem>>, vector<64x128xf32>
      %45 = vector.extract_strided_slice %44 {offsets = [0, 0], sizes = [64, 64], strides = [1, 1]} : vector<64x128xf32> to vector<64x64xf32>
      %46 = vector.extract_strided_slice %44 {offsets = [0, 64], sizes = [64, 1], strides = [1, 1]} : vector<64x128xf32> to vector<64x1xf32>
      %cst_20 = arith.constant 9.99999997E-7 : f32
      %47 = vector.broadcast %cst_20 : f32 to vector<64x1xf32>
      %48 = arith.addf %46, %47 : vector<64x1xf32>
      %49 = vector.broadcast %48 : vector<64x1xf32> to vector<64x64xf32>
      %50 = arith.divf %45, %49 : vector<64x64xf32>
      %c0_21 = arith.constant 0 : index
      %c0_22 = arith.constant 0 : index
      %51 = vector.load %arg4[%c0_21, %c0_22] : memref<64x64xf32, #tpu.memory_space<vmem>>, vector<64x64xf32>
      tpu.vector_store %arg4[%c0_21, %c0_22], %50 {strides = array<i32>} : memref<64x64xf32, #tpu.memory_space<vmem>>, vector<64x64xf32>,
    } else {
    }
    return
  }
  func.func @transform_0(%arg0: i32, %arg1: i32) -> (i32, i32) {
    %c0_i32 = arith.constant 0 : i32
    %c0_i32_0 = arith.constant 0 : i32
    return %arg1, %c0_i32 : i32, i32
  }
  func.func @transform_1(%arg0: i32, %arg1: i32) -> (i32, i32) {
    %c0_i32 = arith.constant 0 : i32
    return %arg0, %arg1 : i32, i32
  }
  func.func @transform_2(%arg0: i32, %arg1: i32) -> (i32, i32) {
    %c0_i32 = arith.constant 0 : i32
    %c0_i32_0 = arith.constant 0 : i32
    return %arg0, %c0_i32 : i32, i32
  }
}

</mosaic_0001>

<bundles_post_ra>
// kernel: tpu_custom_call.1
= control target key start
LH: loop header
LB: loop body
LE: loop exit
PB: predicated region body
PF: predicated region fallthrough
CT: control target
= control target key end

     0   :  { %7 = vsyncpa [#allocation5], 0  ;;  %s3360_s0 = inlined_call_operand.hbm [shape: f32[1024,128], index: 0, kind: input, shape index: {}]   ;;  %s3361_s1 = inlined_call_operand.hbm [shape: bf16[64,1024], index: 1, kind: input, shape index: {}]   ;;  %s3362_s2 = inlined_call_operand.hbm [shape: f32[64,64], index: 2, kind: output, shape index: {}]  }
   0x1   :  { %9 = vsyncpa [#allocation5 + $0x1], 0 }
   0x2   :  { %10 = vsyncpa [#allocation8], 0 }
   0x3   :  { %12 = vsyncpa [#allocation8 + $0x1], 0 }
   0x4   :  { %13 = vsyncpa [#allocation6], 0  ;;  %s2314_s9 = smov 0   ;;  %s2316_s10 = smov 0  }
   0x5   :  { %s2318_s11 = smov 0   ;;  %s2320_s12 = smov 0  }
   0x6   :  { %s2322_s13 = smov 0   ;;  %s2324_s14 = smov 0  }
   0x7 LB: > { %s3363_s15 = sadd.s32 4294967295, %s2284_s14   ;;  %s28_s16 = sadd.s32 1, %s2280_s13  ;;  %s2284_s14 = sphi %s2324_s14, %s19_s14   ;;  %s2280_s13 = sphi %s2322_s13, %s3434_s13   ;;  %s2276_s12 = sphi %s2320_s12, %s3433_s12   ;;  %s2272_s11 = sphi %s2318_s11, %s3432_s11   ;;  %s2268_s10 = sphi %s2316_s10, %s3431_s10   ;;  %s2264_s9 = sphi %s2314_s9, %s3430_s9  }
   0x8   : > { %p29_p0 = scmp.ge.s32.totalorder %s28_s16, 2  ;;  %s38_s17 = sadd.s32 1, %s2272_s11 }
   0x9   : > { %p45_p1 = scmp.ne.s32.totalorder %s2272_s11, %s2268_s10  ;;  %p46_p2 = scmp.eq.s32.totalorder %s2284_s14, 0 }
   0xa   : > { %s3436_s16 = smov (%p29_p0, %s28_s16), 0  ;;  %p51_p4 = scmp.ne.s32.totalorder %s2268_s10, %s2264_s9 }
   0xb   : > { %p2350_p3 = por %p46_p2, %p45_p1  ;;  %s35_s19 = ssub.s32 %s2280_s13, %s3436_s16 }
   0xc   : > { %p52_p5 = scmp.eq.s32.totalorder %s3363_s15, 0  ;;  %p36_p6 = scmp.eq.s32.totalorder %s35_s19, 0 }
   0xd   : > { %p1859_p8 = scmp.lt.s32.totalorder %s2284_s14, 2  ;;  %s2368_s22 = sand.u32 1, %s2272_s11  }
   0xe   : > { %p2359_p7 = por %p52_p5, %p51_p4  ;;  %s1840_s23 = sshll.u32 %s2280_s13, 9 }
   0xf   : > { %s2365_s21 = scalar_select %p36_p6, %s2272_s11, %s38_s17  }
  0x10   : > { %s1824_s24 = sshll.u32 %s2368_s22, 9  ;;  %s138_s27 = scalar_lea.hbm %s3360_s0, %s1840_s23 }
  0x11   : > { %s139_s28 = sshll.u32 %s138_s27, 4  ;;  %s133_s29 = scalar_lea.vmem [#allocation4], %s1824_s24  ;;  %s140_s28 = int_to_ptr.hbm [resolvable:$true] %s139_s28 }
  0x12   : > { %s141_s30 = sshll.u32 %s133_s29, 4  ;;  %p2377_p9 = pnand %p1859_p8, %p2350_p3  ;;  %s142_s30 = int_to_ptr.vmem [resolvable:$true] %s141_s30 }
  0x13   : > { %p1830_p10 = scmp.ge.s32.totalorder %s2284_s14, 1  ;;  %p174_p11 = scmp.lt.s32.totalorder %s2284_s14, 3 }
  0x14   : > { %s130_s4 = scalar_lea.sflag [#allocation5], %s2368_s22  ;;  %s2286_s5 = smov 128  }
  0x15   : > { %s2287_s6 = smov 8   ;;  %p2386_p12 = pnand %p1830_p10, %p174_p11 }
  0x16   : > { %1855 = dma.hbm_to_vmem [thread:$0]  (!%p2377_p9), %s140_s28, 8192, %s142_s30, %s130_s4, %s2286_s5, %s2286_s5, %s2287_s6  }
  0x17   : > { %s1827_s8 = sshll.u32 %s2368_s22, 7  ;;  %s1841_s9 = sshll.u32 %s2280_s13, 4 }
  0x18   : > { %s163_s19 = scalar_lea.hbm %s3361_s1, %s1841_s9  ;;  %s155_s24 = scalar_lea.vmem [#allocation7], %s1827_s8 }
  0x19   : > { %s164_s23 = sshll.u32 %s163_s19, 4  ;;  %s166_s25 = sshll.u32 %s155_s24, 4  ;;  %s165_s23 = int_to_ptr.hbm [resolvable:$true] %s164_s23  ;;  %s167_s25 = int_to_ptr.vmem [resolvable:$true] %s166_s25 }
  0x1a   : > { %s152_s26 = scalar_lea.sflag [#allocation8], %s2368_s22  ;;  %s2288_s27 = smov 512  }
  0x1b   : > { %s2289_s29 = smov 256   ;;  %s2290_s15 = smov 16  }
  0x1c   : > { %1858 = dma.hbm_to_vmem [thread:$0]  (!%p2377_p9), %s165_s23, 2048, %s167_s25, %s152_s26, %s2288_s27, %s2289_s29, %s2290_s15  }
  0x1d   : > { %178 = sbr.rel (%p2386_p12) target bundleno = 1076 (0x434), region = 28 }
  0x22   : > { %s180_s28 = sand.u32 1, %s2268_s10  }
  0x23   : > { %s1831_s30 = sshll.u32 %s180_s28, 9  ;;  %s181_s4 = scalar_lea.sflag [#allocation5], %s180_s28 }
  0x24   : > { %s2401_s5 = scalar_lea.vmem [#allocation4], %s1831_s30 }
  0x25   : > { %2251 = dma.done.wait (%p2359_p7), %s181_s4, 8192  }
  0x26   : > { %2253 = vsyncadd (%p2359_p7), %s181_s4, 4294959104  ;;  %s1832_s22 = sshll.u32 %s180_s28, 7  ;;  %s191_s6 = scalar_lea.sflag [#allocation8], %s180_s28 }
  0x27   : > { %s2407_s3 = scalar_lea.vmem [#allocation7], %s1832_s22 }
  0x28   : > { %2255 = dma.done.wait (%p2359_p7), %s191_s6, 2048  }
  0x29   : > { %2257 = vsyncadd (%p2359_p7), %s191_s6, 4294965248  ;;  %p1833_p13 = scmp.ne.s32.totalorder %s2276_s12, 0 }
  0x2b   : > { %223 = sbr.rel (%p1833_p13) target bundleno = 58 (0x3a), region = 40 }
  0x30   : > { %v2291_v0 = vmov 0.0   ;;  %vm232_vm0 = vcmask 0   ;;  %v2292_v1 = vmov -inf  }
  0x31   : > { %224 = vst [vmem:[#allocation2 + $0x30] sm:$0xff] %v2291_v0 }
  0x32   : > { %225 = vst [vmem:[#allocation2] sm:$0xff] %v2291_v0 }
  0x33   : > { %226 = vst [vmem:[#allocation2 + $0x18] sm:$0xff] %v2291_v0 }
  0x34   : > { %227 = vst [vmem:[#allocation2 + $0x10] sm:$0xff] %v2291_v0 }
  0x35   : > { %228 = vst [vmem:[#allocation2 + $0x8] sm:$0xff] %v2291_v0 }
  0x36   : > { %229 = vst [vmem:[#allocation2 + $0x20] sm:$0xff] %v2291_v0 }
  0x37   : > { %230 = vst [vmem:[#allocation2 + $0x28] sm:$0xff] %v2291_v0 }
  0x38   : > { %231 = vst [vmem:[#allocation2 + $0x38] sm:$0xff] %v2291_v0 }
  0x39   : > { %233 = vst.msk [vmem:[#allocation3] sm:$0x1] %vm232_vm0, %v2292_v1 }
  0x3a PF: > { %v298_v2 = vlaneseq  ;;  %v238_v3 = vld [vmem:[%s2401_s5 + $0x20] sm:$0xff]  ;;  %v236_v5 = vld [vmem:[%s2401_s5 + $0x10] sm:$0xff]  ;;  %v239_v10 = vld [vmem:[%s2401_s5 + $0x28] sm:$0xff]  ;;  %vm567_vm2 = vcmask 0   ;;  %p1835_p0 = scmp.ne.s32.totalorder %s2276_s12, 1 }
  0x3b   : > { %v234_v6 = vld [vmem:[%s2401_s5] sm:$0xff]  ;;  %v237_v11 = vld [vmem:[%s2401_s5 + $0x18] sm:$0xff]  ;;  %v2429_v12 = vld [vmem:[%s2401_s5 + $0x8] sm:$0xff] }
  0x3c   : > { %v2415_v4 = vand.u32 127, %v298_v2  ;;  %3390 = vst [vmem:[#allocation14_spill] sm:$0xff] %v2429_v12  ;;  %v242_v16 = vld [vmem:[%s2401_s5 + $0x40] sm:$0xff]  ;;  %v241_v17 = vld [vmem:[%s2401_s5 + $0x38] sm:$0xff]  ;;  %v240_v18 = vld [vmem:[%s2401_s5 + $0x30] sm:$0xff] }
  0x3d   : > { %v245_v22 = vld [vmem:[%s2401_s5 + $0x58] sm:$0xff]  ;;  %v244_v23 = vld [vmem:[%s2401_s5 + $0x50] sm:$0xff]  ;;  %v243_v24 = vld [vmem:[%s2401_s5 + $0x48] sm:$0xff] }
  0x3e   : > { %3389 = vst [vmem:[#allocation13_spill] sm:$0xff] %v2415_v4  ;;  %vm301_vm1 = vcmp.eq.s32.totalorder %v2415_v4, 64  ;;  %v248_v28 = vld [vmem:[%s2401_s5 + $0x70] sm:$0xff]  ;;  %v247_v29 = vld [vmem:[%s2401_s5 + $0x68] sm:$0xff]  ;;  %v246_v30 = vld [vmem:[%s2401_s5 + $0x60] sm:$0xff] }
  0x3f   : > { %v306_v7 = vsel %vm301_vm1, %v238_v3, 0.0  ;;  %v304_v8 = vsel %vm301_vm1, %v236_v5, 0.0  ;;  %v302_v9 = vsel %vm301_vm1, %v234_v6, 0.0  ;;  %v307_v13 = vsel %vm301_vm1, %v239_v10, 0.0  ;;  %v251_v34 = vld [vmem:[%s2401_s5 + $0x88] sm:$0xff]  ;;  %v250_v35 = vld [vmem:[%s2401_s5 + $0x80] sm:$0xff] }
  0x40   : > { %374 = vadd.xlane.f32.xlu2 %v306_v7  ;;  %370 = vadd.xlane.f32.xlu1 %v304_v8  ;;  %v305_v14 = vsel %vm301_vm1, %v237_v11, 0.0  ;;  %v303_v15 = vsel %vm301_vm1, %v2429_v12, 0.0  ;;  %v310_v19 = vsel %vm301_vm1, %v242_v16, 0.0  ;;  %v309_v20 = vsel %vm301_vm1, %v241_v17, 0.0  ;;  %v249_v36 = vld [vmem:[%s2401_s5 + $0x78] sm:$0xff]  ;;  %v254_v40 = vld [vmem:[%s2401_s5 + $0xa0] sm:$0xff] }
  0x41   : > { %366 = vadd.xlane.f32.xlu0 %v302_v9  ;;  %v308_v21 = vsel %vm301_vm1, %v240_v18, 0.0  ;;  %v313_v25 = vsel %vm301_vm1, %v245_v22, 0.0  ;;  %v312_v26 = vsel %vm301_vm1, %v244_v23, 0.0  ;;  %v311_v27 = vsel %vm301_vm1, %v243_v24, 0.0  ;;  %v253_v41 = vld [vmem:[%s2401_s5 + $0x98] sm:$0xff]  ;;  %v252_v42 = vld [vmem:[%s2401_s5 + $0x90] sm:$0xff] }
  0x42   : > { %v316_v31 = vsel %vm301_vm1, %v248_v28, 0.0  ;;  %v315_v32 = vsel %vm301_vm1, %v247_v29, 0.0  ;;  %v314_v33 = vsel %vm301_vm1, %v246_v30, 0.0  ;;  %v319_v37 = vsel %vm301_vm1, %v251_v34, 0.0  ;;  %v257_v46 = vld [vmem:[%s2401_s5 + $0xb8] sm:$0xff]  ;;  %v256_v47 = vld [vmem:[%s2401_s5 + $0xb0] sm:$0xff] }
  0x43   : > { %v318_v38 = vsel %vm301_vm1, %v250_v35, 0.0  ;;  %v317_v39 = vsel %vm301_vm1, %v249_v36, 0.0  ;;  %v322_v43 = vsel %vm301_vm1, %v254_v40, 0.0  ;;  %v321_v44 = vsel %vm301_vm1, %v253_v41, 0.0  ;;  %v255_v48 = vld [vmem:[%s2401_s5 + $0xa8] sm:$0xff]  ;;  %v260_v52 = vld [vmem:[%s2401_s5 + $0xd0] sm:$0xff] }
  0x44   : > { %v320_v45 = vsel %vm301_vm1, %v252_v42, 0.0  ;;  %v325_v49 = vsel %vm301_vm1, %v257_v46, 0.0  ;;  %v324_v50 = vsel %vm301_vm1, %v256_v47, 0.0  ;;  %v323_v51 = vsel %vm301_vm1, %v255_v48, 0.0  ;;  %v259_v53 = vld [vmem:[%s2401_s5 + $0xc8] sm:$0xff]  ;;  %v258_v54 = vld [vmem:[%s2401_s5 + $0xc0] sm:$0xff] }
  0x45   : > { %v328_v55 = vsel %vm301_vm1, %v260_v52, 0.0  ;;  %v327_v56 = vsel %vm301_vm1, %v259_v53, 0.0  ;;  %v326_v57 = vsel %vm301_vm1, %v258_v54, 0.0  ;;  %v263_v58 = vld [vmem:[%s2401_s5 + $0xe8] sm:$0xff]  ;;  %v262_v59 = vld [vmem:[%s2401_s5 + $0xe0] sm:$0xff]  ;;  %v261_v60 = vld [vmem:[%s2401_s5 + $0xd8] sm:$0xff] }
  0x46   : > { %v331_v61 = vsel %vm301_vm1, %v263_v58, 0.0  ;;  %v330_v62 = vsel %vm301_vm1, %v262_v59, 0.0  ;;  %v329_v63 = vsel %vm301_vm1, %v261_v60, 0.0  ;;  %v266_v0 = vld [vmem:[%s2401_s5 + $0x100] sm:$0xff]  ;;  %v265_v1 = vld [vmem:[%s2401_s5 + $0xf8] sm:$0xff]  ;;  %v264_v2 = vld [vmem:[%s2401_s5 + $0xf0] sm:$0xff] }
  0x47   : > { %v334_v3 = vsel %vm301_vm1, %v266_v0, 0.0  ;;  %v333_v5 = vsel %vm301_vm1, %v265_v1, 0.0  ;;  %v332_v6 = vsel %vm301_vm1, %v264_v2, 0.0  ;;  %v269_v7 = vld [vmem:[%s2401_s5 + $0x118] sm:$0xff]  ;;  %v268_v8 = vld [vmem:[%s2401_s5 + $0x110] sm:$0xff]  ;;  %v267_v9 = vld [vmem:[%s2401_s5 + $0x108] sm:$0xff] }
  0x48   : > { %376 = vadd.xlane.f32.xlu2 %v307_v13  ;;  %372 = vadd.xlane.f32.xlu1 %v305_v14  ;;  %v337_v10 = vsel %vm301_vm1, %v269_v7, 0.0  ;;  %v336_v11 = vsel %vm301_vm1, %v268_v8, 0.0  ;;  %v335_v13 = vsel %vm301_vm1, %v267_v9, 0.0  ;;  %v272_v14 = vld [vmem:[%s2401_s5 + $0x130] sm:$0xff]  ;;  %v270_v16 = vld [vmem:[%s2401_s5 + $0x120] sm:$0xff]  ;;  %v273_v22 = vld [vmem:[%s2401_s5 + $0x138] sm:$0xff] }
  0x49   : > { %368 = vadd.xlane.f32.xlu0 %v303_v15  ;;  %v271_v15 = vld [vmem:[%s2401_s5 + $0x128] sm:$0xff]  ;;  %v340_v17 = vsel %vm301_vm1, %v272_v14, 0.0  ;;  %v276_v28 = vld [vmem:[%s2401_s5 + $0x150] sm:$0xff]  ;;  %v285_v54 = vld [vmem:[%s2401_s5 + $0x198] sm:$0xff] }
  0x4a   : > { %v339_v18 = vsel %vm301_vm1, %v271_v15, 0.0  ;;  %v279_v36 = vld [vmem:[%s2401_s5 + $0x168] sm:$0xff]  ;;  %v284_v41 = vld [vmem:[%s2401_s5 + $0x190] sm:$0xff]  ;;  %v353_v58 = vsel %vm301_vm1, %v285_v54, 0.0  ;;  %v290_v59 = vld [vmem:[%s2401_s5 + $0x1c0] sm:$0xff] }
  0x4b   : > { %v347_v40 = vsel %vm301_vm1, %v279_v36, 0.0  ;;  %v283_v42 = vld [vmem:[%s2401_s5 + $0x188] sm:$0xff]  ;;  %v352_v47 = vsel %vm301_vm1, %v284_v41, 0.0  ;;  %v289_v60 = vld [vmem:[%s2401_s5 + $0x1b8] sm:$0xff]  ;;  %v358_v1 = vsel %vm301_vm1, %v290_v59, 0.0  ;;  %v296_v15 = vld [vmem:[%s2401_s5 + $0x1f0] sm:$0xff] }
  0x4c   : > { %v351_v48 = vsel %vm301_vm1, %v283_v42, 0.0  ;;  %v357_v2 = vsel %vm301_vm1, %v289_v60, 0.0  ;;  %v291_v9 = vld [vmem:[%s2401_s5 + $0x1c8] sm:$0xff] }
  0x4d   : > { %v359_v14 = vsel %vm301_vm1, %v291_v9, 0.0 }
  0x50   : > { %382 = vadd.xlane.f32.xlu2 %v310_v19  ;;  %380 = vadd.xlane.f32.xlu1 %v309_v20  ;;  %v338_v19 = vsel %vm301_vm1, %v270_v16, 0.0  ;;  %v275_v20 = vld [vmem:[%s2401_s5 + $0x148] sm:$0xff] }
  0x51   : > { %378 = vadd.xlane.f32.xlu0 %v308_v21  ;;  %v274_v21 = vld [vmem:[%s2401_s5 + $0x140] sm:$0xff]  ;;  %v343_v23 = vsel %vm301_vm1, %v275_v20, 0.0  ;;  %v295_v16 = vld [vmem:[%s2401_s5 + $0x1e8] sm:$0xff] }
  0x52   : > { %v342_v24 = vsel %vm301_vm1, %v274_v21, 0.0  ;;  %v364_v21 = vsel %vm301_vm1, %v296_v15, 0.0 }
  0x58   : > { %388 = vadd.xlane.f32.xlu2 %v313_v25  ;;  %386 = vadd.xlane.f32.xlu1 %v312_v26  ;;  %v341_v25 = vsel %vm301_vm1, %v273_v22, 0.0  ;;  %v278_v26 = vld [vmem:[%s2401_s5 + $0x160] sm:$0xff]  ;;  %v363_v22 = vsel %vm301_vm1, %v295_v16, 0.0 }
  0x59   : > { %384 = vadd.xlane.f32.xlu0 %v311_v27  ;;  %v277_v27 = vld [vmem:[%s2401_s5 + $0x158] sm:$0xff]  ;;  %v346_v29 = vsel %vm301_vm1, %v278_v26, 0.0 }
  0x5a   : > { %v345_v30 = vsel %vm301_vm1, %v277_v27, 0.0  ;;  %v297_v26 = vld [vmem:[%s2401_s5 + $0x1f8] sm:$0xff] }
  0x60   : > { %394 = vadd.xlane.f32.xlu2 %v316_v31  ;;  %392 = vadd.xlane.f32.xlu1 %v315_v32  ;;  %v344_v31 = vsel %vm301_vm1, %v276_v28, 0.0  ;;  %v281_v32 = vld [vmem:[%s2401_s5 + $0x178] sm:$0xff]  ;;  %v365_v28 = vsel %vm301_vm1, %v297_v26, 0.0 }
  0x61   : > { %390 = vadd.xlane.f32.xlu0 %v314_v33  ;;  %v280_v33 = vld [vmem:[%s2401_s5 + $0x170] sm:$0xff] }
  0x68   : > { %400 = vadd.xlane.f32.xlu2 %v319_v37  ;;  %398 = vadd.xlane.f32.xlu1 %v318_v38  ;;  %v349_v38 = vsel %vm301_vm1, %v281_v32, 0.0 }
  0x69   : > { %396 = vadd.xlane.f32.xlu0 %v317_v39  ;;  %v348_v39 = vsel %vm301_vm1, %v280_v33, 0.0 }
  0x70   : > { %406 = vadd.xlane.f32.xlu2 %v322_v43  ;;  %404 = vadd.xlane.f32.xlu1 %v321_v44 }
  0x71   : > { %402 = vadd.xlane.f32.xlu0 %v320_v45  ;;  %v282_v45 = vld [vmem:[%s2401_s5 + $0x180] sm:$0xff] }
  0x78   : > { %412 = vadd.xlane.f32.xlu2 %v325_v49  ;;  %410 = vadd.xlane.f32.xlu1 %v324_v50  ;;  %v350_v49 = vsel %vm301_vm1, %v282_v45, 0.0  ;;  %v287_v50 = vld [vmem:[%s2401_s5 + $0x1a8] sm:$0xff] }
  0x79   : > { %408 = vadd.xlane.f32.xlu0 %v323_v51  ;;  %v286_v51 = vld [vmem:[%s2401_s5 + $0x1a0] sm:$0xff] }
  0x80   : > { %418 = vadd.xlane.f32.xlu2 %v328_v55  ;;  %416 = vadd.xlane.f32.xlu1 %v327_v56  ;;  %v355_v56 = vsel %vm301_vm1, %v287_v50, 0.0 }
  0x81   : > { %414 = vadd.xlane.f32.xlu0 %v326_v57  ;;  %v354_v57 = vsel %vm301_vm1, %v286_v51, 0.0 }
  0x88   : > { %424 = vadd.xlane.f32.xlu2 %v331_v61  ;;  %422 = vadd.xlane.f32.xlu1 %v330_v62 }
  0x89   : > { %420 = vadd.xlane.f32.xlu0 %v329_v63  ;;  %v288_v63 = vld [vmem:[%s2401_s5 + $0x1b0] sm:$0xff] }
  0x90   : > { %430 = vadd.xlane.f32.xlu2 %v334_v3  ;;  %428 = vadd.xlane.f32.xlu1 %v333_v5  ;;  %v356_v3 = vsel %vm301_vm1, %v288_v63, 0.0  ;;  %v293_v5 = vld [vmem:[%s2401_s5 + $0x1d8] sm:$0xff] }
  0x91   : > { %426 = vadd.xlane.f32.xlu0 %v332_v6  ;;  %v292_v6 = vld [vmem:[%s2401_s5 + $0x1d0] sm:$0xff] }
  0x98   : > { %436 = vadd.xlane.f32.xlu2 %v337_v10  ;;  %434 = vadd.xlane.f32.xlu1 %v336_v11  ;;  %v361_v11 = vsel %vm301_vm1, %v293_v5, 0.0 }
  0x99   : > { %432 = vadd.xlane.f32.xlu0 %v335_v13  ;;  %v360_v13 = vsel %vm301_vm1, %v292_v6, 0.0 }
  0xa0   : > { %442 = vadd.xlane.f32.xlu2 %v340_v17  ;;  %440 = vadd.xlane.f32.xlu1 %v339_v18 }
  0xa1   : > { %438 = vadd.xlane.f32.xlu0 %v338_v19  ;;  %v294_v19 = vld [vmem:[%s2401_s5 + $0x1e0] sm:$0xff] }
  0xa8   : > { %448 = vadd.xlane.f32.xlu2 %v343_v23  ;;  %446 = vadd.xlane.f32.xlu1 %v342_v24  ;;  %v362_v23 = vsel %vm301_vm1, %v294_v19, 0.0 }
  0xa9   : > { %444 = vadd.xlane.f32.xlu0 %v341_v25 }
  0xb0   : > { %454 = vadd.xlane.f32.xlu2 %v346_v29  ;;  %452 = vadd.xlane.f32.xlu1 %v345_v30 }
  0xb1   : > { %450 = vadd.xlane.f32.xlu0 %v344_v31 }
  0xb3   : > { %v2557_v34 = vpop.xlane.xlu2 %374  ;;  %v2559_v35 = vpop.xlane.xlu1 %370 }
  0xb4   : > { %3391 = vst [vmem:[#allocation15_spill] sm:$0xff] %v2557_v34  ;;  %v2562_v37 = vpop.xlane.xlu0 %366 }
  0xb5   : > { %v495_v15 = vmax.f32 %v2562_v37, %v2557_v34 }
  0xb8   : > { %460 = vadd.xlane.f32.xlu2 %v349_v38  ;;  %458 = vadd.xlane.f32.xlu1 %v348_v39 }
  0xb9   : > { %456 = vadd.xlane.f32.xlu0 %v347_v40 }
  0xbb   : > { %v2572_v43 = vpop.xlane.xlu2 %376  ;;  %v2574_v44 = vpop.xlane.xlu1 %372 }
  0xbc   : > { %3392 = vst [vmem:[#allocation16_spill] sm:$0xff] %v2572_v43  ;;  %v2577_v46 = vpop.xlane.xlu0 %368 }
  0xbd   : > { %v496_v16 = vmax.f32 %v2577_v46, %v2572_v43 }
  0xc0   : > { %466 = vadd.xlane.f32.xlu2 %v352_v47  ;;  %464 = vadd.xlane.f32.xlu1 %v351_v48 }
  0xc1   : > { %462 = vadd.xlane.f32.xlu0 %v350_v49 }
  0xc3   : > { %v2587_v52 = vpop.xlane.xlu2 %382  ;;  %v2589_v53 = vpop.xlane.xlu1 %380 }
  0xc4   : > { %3393 = vst [vmem:[#allocation17_spill] sm:$0xff] %v2587_v52  ;;  %v2592_v55 = vpop.xlane.xlu0 %378  ;;  %v499_v19 = vmax.f32 %v495_v15, %v2587_v52 }
  0xc5   : > { %3394 = vst [vmem:[#allocation18_spill] sm:$0xff] %v2589_v53 }
  0xc6   : > { %3395 = vst [vmem:[#allocation19_spill] sm:$0xff] %v2592_v55 }
  0xc8   : > { %472 = vadd.xlane.f32.xlu2 %v355_v56  ;;  %470 = vadd.xlane.f32.xlu1 %v354_v57 }
  0xc9   : > { %468 = vadd.xlane.f32.xlu0 %v353_v58 }
  0xcb   : > { %v2602_v61 = vpop.xlane.xlu2 %388  ;;  %v2604_v62 = vpop.xlane.xlu1 %386 }
  0xcc   : > { %v2607_v0 = vpop.xlane.xlu0 %384 }
  0xd0   : > { %478 = vadd.xlane.f32.xlu2 %v358_v1  ;;  %476 = vadd.xlane.f32.xlu1 %v357_v2 }
  0xd1   : > { %474 = vadd.xlane.f32.xlu0 %v356_v3 }
  0xd3   : > { %v2617_v7 = vpop.xlane.xlu2 %394  ;;  %v2619_v8 = vpop.xlane.xlu1 %392 }
  0xd4   : > { %3396 = vst [vmem:[#allocation20_spill] sm:$0xff] %v2619_v8  ;;  %v2622_v10 = vpop.xlane.xlu0 %390 }
  0xd5   : > { %v503_v12 = vmax.f32 %v499_v19, %v2622_v10 }
  0xd8   : > { %484 = vadd.xlane.f32.xlu2 %v361_v11  ;;  %482 = vadd.xlane.f32.xlu1 %v360_v13 }
  0xd9   : > { %480 = vadd.xlane.f32.xlu0 %v359_v14 }
  0xdb   : > { %v2632_v17 = vpop.xlane.xlu2 %400  ;;  %v2634_v18 = vpop.xlane.xlu1 %398 }
  0xdc   : > { %3397 = vst [vmem:[#allocation21_spill] sm:$0xff] %v2634_v18  ;;  %v2637_v20 = vpop.xlane.xlu0 %396  ;;  %v507_v52 = vmax.f32 %v503_v12, %v2634_v18 }
  0xe0   : > { %490 = vadd.xlane.f32.xlu2 %v364_v21  ;;  %488 = vadd.xlane.f32.xlu1 %v363_v22  ;;  %v498_v21 = vmax.f32 %v2574_v44, %v2589_v53  ;;  %v497_v22 = vmax.f32 %v2559_v35, %v2592_v55 }
  0xe1   : > { %486 = vadd.xlane.f32.xlu0 %v362_v23  ;;  %v500_v23 = vmax.f32 %v496_v16, %v2607_v0 }
  0xe2   : > { %v502_v26 = vmax.f32 %v498_v21, %v2602_v61 }
  0xe3   : > { %v2645_v24 = vpop.xlane.xlu2 %406  ;;  %v2647_v25 = vpop.xlane.xlu1 %404  ;;  %v504_v4 = vmax.f32 %v500_v23, %v2619_v8 }
  0xe4   : > { %3398 = vst [vmem:[#allocation22_spill] sm:$0xff] %v2647_v25  ;;  %v2650_v27 = vpop.xlane.xlu0 %402  ;;  %v506_v16 = vmax.f32 %v502_v26, %v2637_v20  ;;  %v511_v21 = vmax.f32 %v507_v52, %v2645_v24 }
  0xe5   : > { %v508_v53 = vmax.f32 %v504_v4, %v2632_v17 }
  0xe9   : > { %492 = vadd.xlane.f32.xlu0 %v365_v28  ;;  %v501_v28 = vmax.f32 %v497_v22, %v2604_v62  ;;  %v510_v22 = vmax.f32 %v506_v16, %v2647_v25 }
  0xeb   : > { %v2654_v29 = vpop.xlane.xlu2 %412  ;;  %v2656_v30 = vpop.xlane.xlu1 %410  ;;  %v505_v15 = vmax.f32 %v501_v28, %v2617_v7 }
  0xec   : > { %v2658_v31 = vpop.xlane.xlu0 %408  ;;  %v514_v8 = vmax.f32 %v510_v22, %v2654_v29 }
  0xed   : > { %v509_v19 = vmax.f32 %v505_v15, %v2650_v27  ;;  %v512_v23 = vmax.f32 %v508_v53, %v2658_v31 }
  0xef   : > { %v513_v28 = vmax.f32 %v509_v19, %v2656_v30 }
  0xf3   : > { %v2660_v32 = vpop.xlane.xlu2 %418  ;;  %v2662_v33 = vpop.xlane.xlu1 %416 }
  0xf4   : > { %v2664_v36 = vpop.xlane.xlu0 %414  ;;  %v516_v4 = vmax.f32 %v512_v23, %v2662_v33  ;;  %v517_v26 = vmax.f32 %v513_v28, %v2660_v32 }
  0xf5   : > { %v515_v12 = vmax.f32 %v511_v21, %v2664_v36 }
  0xfb   : > { %v2666_v38 = vpop.xlane.xlu2 %424  ;;  %v2668_v39 = vpop.xlane.xlu1 %422 }
  0xfc   : > { %v2670_v40 = vpop.xlane.xlu0 %420  ;;  %v520_v18 = vmax.f32 %v516_v4, %v2666_v38  ;;  %v519_v52 = vmax.f32 %v515_v12, %v2668_v39 }
  0xfd   : > { %v518_v16 = vmax.f32 %v514_v8, %v2670_v40 }
 0x103   : > { %v2672_v41 = vpop.xlane.xlu2 %430  ;;  %v2674_v42 = vpop.xlane.xlu1 %428 }
 0x104   : > { %3399 = vst [vmem:[#allocation23_spill] sm:$0xff] %v2672_v41  ;;  %v2676_v45 = vpop.xlane.xlu0 %426  ;;  %v523_v53 = vmax.f32 %v519_v52, %v2672_v41  ;;  %v522_v15 = vmax.f32 %v518_v16, %v2674_v42 }
 0x105   : > { %v521_v22 = vmax.f32 %v517_v26, %v2676_v45 }
 0x10b   : > { %v2678_v47 = vpop.xlane.xlu2 %436  ;;  %v2680_v48 = vpop.xlane.xlu1 %434 }
 0x10c   : > { %3400 = vst [vmem:[#allocation24_spill] sm:$0xff] %v2678_v47  ;;  %v2682_v49 = vpop.xlane.xlu0 %432  ;;  %v526_v21 = vmax.f32 %v522_v15, %v2678_v47  ;;  %v525_v28 = vmax.f32 %v521_v22, %v2680_v48 }
 0x10d   : > { %3401 = vst [vmem:[#allocation25_spill] sm:$0xff] %v2682_v49  ;;  %v524_v19 = vmax.f32 %v520_v18, %v2682_v49 }
 0x113   : > { %v2684_v50 = vpop.xlane.xlu2 %442  ;;  %v2686_v51 = vpop.xlane.xlu1 %440 }
 0x114   : > { %v2688_v54 = vpop.xlane.xlu0 %438  ;;  %v528_v4 = vmax.f32 %v524_v19, %v2686_v51  ;;  %v529_v52 = vmax.f32 %v525_v28, %v2684_v50 }
 0x115   : > { %3402 = vst [vmem:[#allocation26_spill] sm:$0xff] %v2688_v54  ;;  %v527_v8 = vmax.f32 %v523_v53, %v2688_v54 }
 0x11b   : > { %v2690_v56 = vpop.xlane.xlu2 %448  ;;  %v2692_v57 = vpop.xlane.xlu1 %446 }
 0x11c   : > { %v2694_v58 = vpop.xlane.xlu0 %444  ;;  %v532_v16 = vmax.f32 %v528_v4, %v2690_v56  ;;  %v531_v26 = vmax.f32 %v527_v8, %v2692_v57 }
 0x11d   : > { %v530_v18 = vmax.f32 %v526_v21, %v2694_v58 }
 0x123   : > { %v2696_v59 = vpop.xlane.xlu2 %454  ;;  %v2698_v60 = vpop.xlane.xlu1 %452 }
 0x124   : > { %v2700_v63 = vpop.xlane.xlu0 %450  ;;  %v535_v41 = vmax.f32 %v531_v26, %v2696_v59  ;;  %v534_v15 = vmax.f32 %v530_v18, %v2698_v60 }
 0x125   : > { %v533_v22 = vmax.f32 %v529_v52, %v2700_v63 }
 0x12b   : > { %v2702_v1 = vpop.xlane.xlu2 %460  ;;  %v2704_v2 = vpop.xlane.xlu1 %458 }
 0x12c   : > { %v2706_v3 = vpop.xlane.xlu0 %456  ;;  %v538_v53 = vmax.f32 %v534_v15, %v2702_v1  ;;  %v537_v28 = vmax.f32 %v533_v22, %v2704_v2 }
 0x12d   : > { %v536_v19 = vmax.f32 %v532_v16, %v2706_v3 }
 0x133   : > { %v2708_v5 = vpop.xlane.xlu2 %466  ;;  %v2710_v6 = vpop.xlane.xlu1 %464 }
 0x134   : > { %3403 = vst [vmem:[#allocation27_spill] sm:$0xff] %v2708_v5  ;;  %v2712_v9 = vpop.xlane.xlu0 %462  ;;  %v540_v4 = vmax.f32 %v536_v19, %v2710_v6  ;;  %v541_v21 = vmax.f32 %v537_v28, %v2708_v5 }
 0x135   : > { %3404 = vst [vmem:[#allocation28_spill] sm:$0xff] %v2710_v6  ;;  %v539_v8 = vmax.f32 %v535_v41, %v2712_v9 }
 0x136   : > { %3405 = vst [vmem:[#allocation29_spill] sm:$0xff] %v2712_v9 }
 0x13b   : > { %v2714_v11 = vpop.xlane.xlu1 %470  ;;  %v2716_v13 = vpop.xlane.xlu2 %472 }
 0x13c   : > { %3406 = vst [vmem:[#allocation30_spill] sm:$0xff] %v2714_v11  ;;  %v2718_v14 = vpop.xlane.xlu0 %468  ;;  %v544_v26 = vmax.f32 %v540_v4, %v2716_v13  ;;  %v543_v18 = vmax.f32 %v539_v8, %v2714_v11 }
 0x13d   : > { %3407 = vst [vmem:[#allocation31_spill] sm:$0xff] %v2716_v13  ;;  %v542_v52 = vmax.f32 %v538_v53, %v2718_v14 }
 0x13e   : > { %3408 = vst [vmem:[#allocation32_spill] sm:$0xff] %v2718_v14 }
 0x143   : > { %v2734_v34 = vpop.xlane.xlu1 %476  ;;  %v2742_v55 = vpop.xlane.xlu2 %478 }
 0x144   : > { %v2736_v43 = vpop.xlane.xlu0 %474  ;;  %v547_v16 = vmax.f32 %v543_v18, %v2742_v55  ;;  %v546_v15 = vmax.f32 %v542_v52, %v2734_v34 }
 0x145   : > { %v545_v22 = vmax.f32 %v541_v21, %v2736_v43 }
 0x14b   : > { %v2762_v23 = vpop.xlane.xlu1 %482  ;;  %v2768_v12 = vpop.xlane.xlu2 %484 }
 0x14c   : > { %v2756_v25 = vpop.xlane.xlu0 %480  ;;  %v550_v41 = vmax.f32 %v546_v15, %v2768_v12  ;;  %v549_v28 = vmax.f32 %v545_v22, %v2762_v23  ;;  %v2293_v22 = vmov 0  }
 0x14d   : > { %v548_v19 = vmax.f32 %v544_v26, %v2756_v25  ;;  %1925 = vset.pattern.permute.xlu0 %v2293_v22  ;;  %1924 = vset.pattern.permute.xlu2 %v2293_v22 }
 0x14e   : > { %1923 = vset.pattern.permute.xlu1 %v2293_v22 }
 0x153   : > { %v2788_v47 = vpop.xlane.xlu1 %488  ;;  %v2794_v6 = vpop.xlane.xlu2 %490 }
 0x154   : > { %v2778_v49 = vpop.xlane.xlu0 %486  ;;  %v552_v4 = vmax.f32 %v548_v19, %v2788_v47  ;;  %v553_v18 = vmax.f32 %v549_v28, %v2794_v6 }
 0x155   : > { %v551_v53 = vmax.f32 %v547_v16, %v2778_v49  ;;  %v2804_v16 = vld [vmem:[#allocation3] sm:$0x1] }
 0x157   : > { %v555_v14 = vmax.f32 %v551_v53, %v552_v4  ;;  %v3409_v53 = vld [vmem:[#allocation15_spill] sm:$0xff] }
 0x15c   : > { %v2800_v8 = vpop.xlane.xlu0 %492 }
 0x15d   : > { %v554_v52 = vmax.f32 %v550_v41, %v2800_v8 }
 0x15f   : > { %v556_v21 = vmax.f32 %v553_v18, %v554_v52 }
 0x161   : > { %v557_v9 = vmax.f32 %v555_v14, %v556_v21 }
 0x163   : > { %v558_v26 = vrot.slane %v557_v9, 4 }
 0x165   : > { %v559_v11 = vmax.f32 %v557_v9, %v558_v26 }
 0x167   : > { %v560_v5 = vrot.slane %v559_v11, 2 }
 0x169   : > { %v561_v54 = vmax.f32 %v559_v11, %v560_v5 }
 0x16b   : > { %v562_v15 = vrot.slane %v561_v54, 1 }
 0x16d   : > { %v563_v13 = vmax.f32 %v561_v54, %v562_v15 }
 0x16f   : > { %1842 = vpush %v563_v13 }
 0x1a0   : > { %s1843_s15 = spop %1842 }
 0x1a1   : > { %v565_v19 = vstv %s1843_s15 }
 0x1a2   : > { %v2807_v41 = vmax.f32 %v2804_v16, %v565_v19  ;;  %v3410_v19 = vld [vmem:[#allocation19_spill] sm:$0xff] }
 0x1a4   : > { %568 = vst.msk [vmem:[#allocation3] sm:$0x1] %vm567_vm2, %v2807_v41  ;;  %v569_v5 = vsub.f32 %v2804_v16, %v2807_v41  ;;  %v2813_v54 = vperm.slane %v2807_v41, 0  ;;  %v2077_v16 = vld [vmem:[%s2401_s5 + $0xa0] sm:$0xff] }
 0x1a5   : > { %v787_v41 = vmax.f32 %v2077_v16, 0.0 }
 0x1a6   : > { %v575_v9 = vsub.f32 %v2562_v37, %v2813_v54  ;;  %v576_v11 = vsub.f32 %v2577_v46, %v2813_v54  ;;  %v577_v13 = vsub.f32 %v2559_v35, %v2813_v54  ;;  %v579_v18 = vsub.f32 %v3409_v53, %v2813_v54 }
 0x1a7   : > { %v578_v52 = vsub.f32 %v2574_v44, %v2813_v54  ;;  %v584_v37 = vsub.f32 %v2607_v0, %v2813_v54  ;;  %v587_v0 = vsub.f32 %v2622_v10, %v2813_v54  ;;  %v590_v10 = vsub.f32 %v2637_v20, %v2813_v54 }
 0x1a8   : > { %v639_v14 = vmul.f32 1.442695, %v575_v9  ;;  %v641_v28 = vmul.f32 1.442695, %v576_v11  ;;  %v643_v4 = vmul.f32 1.442695, %v577_v13  ;;  %v581_v9 = vsub.f32 %v3410_v19, %v2813_v54 }
 0x1a9   : > { %v647_v21 = vmul.f32 1.442695, %v579_v18  ;;  %v645_v46 = vmul.f32 1.442695, %v578_v52  ;;  %v657_v15 = vmul.f32 1.442695, %v584_v37  ;;  %v593_v20 = vsub.f32 %v2650_v27, %v2813_v54 }
 0x1aa   : > { %1926 = vpow2.f32 %v639_v14  ;;  %v3411_v11 = vld [vmem:[#allocation16_spill] sm:$0xff]  ;;  %v651_v13 = vmul.f32 1.442695, %v581_v9  ;;  %v3412_v52 = vld [vmem:[#allocation17_spill] sm:$0xff] }
 0x1ab   : > { %1928 = vpow2.f32 %v641_v28  ;;  %v580_v44 = vsub.f32 %v3411_v11, %v2813_v54  ;;  %v583_v37 = vsub.f32 %v3412_v52, %v2813_v54  ;;  %v586_v11 = vsub.f32 %v2602_v61, %v2813_v54 }
 0x1ac   : > { %1930 = vpow2.f32 %v643_v4  ;;  %v663_v4 = vmul.f32 1.442695, %v587_v0  ;;  %v589_v61 = vsub.f32 %v2617_v7, %v2813_v54  ;;  %v592_v7 = vsub.f32 %v2632_v17, %v2813_v54 }
 0x1ad   : > { %1932 = vpow2.f32 %v647_v21  ;;  %v649_v14 = vmul.f32 1.442695, %v580_v44  ;;  %v3413_v21 = vld [vmem:[#allocation18_spill] sm:$0xff]  ;;  %v585_v44 = vsub.f32 %v2604_v62, %v2813_v54  ;;  %v661_v0 = vmul.f32 1.442695, %v586_v11  ;;  %v3414_v62 = vld [vmem:[#allocation20_spill] sm:$0xff] }
 0x1ae   : > { %1934 = vpow2.f32 %v645_v46  ;;  %v582_v46 = vsub.f32 %v3413_v21, %v2813_v54  ;;  %v667_v27 = vmul.f32 1.442695, %v589_v61  ;;  %v595_v17 = vsub.f32 %v2645_v24, %v2813_v54 }
 0x1af   : > { %1936 = vpow2.f32 %v657_v15  ;;  %v638_v24 = vsub.f32 %v2800_v8, %v2813_v54  ;;  %v621_v61 = vsub.f32 %v2704_v2, %v2813_v54  ;;  %v637_v8 = vsub.f32 %v2794_v6, %v2813_v54 }
 0x1b0   : > { %v1927_v26 = vpop.eup %1926  ;;  %1938 = vpow2.f32 %v651_v13  ;;  %v653_v15 = vmul.f32 1.442695, %v582_v46  ;;  %v659_v13 = vmul.f32 1.442695, %v585_v44  ;;  %v622_v46 = vsub.f32 %v2702_v1, %v2813_v54  ;;  %v3416_v44 = vld [vmem:[#allocation22_spill] sm:$0xff] }
 0x1b1   : > { %v1929_v35 = vpop.eup %1928  ;;  %899 = vperm.xlu1 %1923, %v1927_v26   ;;  %1940 = vpow2.f32 %v649_v14  ;;  %v655_v26 = vmul.f32 1.442695, %v583_v37  ;;  %v606_v1 = vsub.f32 %v2674_v42, %v2813_v54  ;;  %v605_v42 = vsub.f32 %v2676_v45, %v2813_v54 }
 0x1b2   : > { %v1931_v22 = vpop.eup %1930  ;;  %904 = vperm.xlu2 %1924, %v1929_v35   ;;  %1942 = vpow2.f32 %v663_v4  ;;  %v604_v45 = vsub.f32 %v2666_v38, %v2813_v54  ;;  %v620_v2 = vsub.f32 %v2706_v3, %v2813_v54  ;;  %v603_v38 = vsub.f32 %v2668_v39, %v2813_v54 }
 0x1b3   : > { %909 = vperm.xlu0 %1925, %v1931_v22   ;;  %v1933_v28 = vpop.eup %1932  ;;  %v669_v22 = vmul.f32 1.442695, %v590_v10  ;;  %1944 = vpow2.f32 %v655_v26  ;;  %v3415_v26 = vld [vmem:[#allocation21_spill] sm:$0xff]  ;;  %v636_v6 = vsub.f32 %v2788_v47, %v2813_v54  ;;  %v619_v3 = vsub.f32 %v2696_v59, %v2813_v54 }
 0x1b4   : > { %v1935_v53 = vpop.eup %1934  ;;  %1946 = vpow2.f32 %v653_v15  ;;  %v591_v15 = vsub.f32 %v3415_v26, %v2813_v54  ;;  %v729_v26 = vmul.f32 1.442695, %v620_v2  ;;  %v602_v39 = vsub.f32 %v2670_v40, %v2813_v54 }
 0x1b5   : > { %v1937_v18 = vpop.eup %1936  ;;  %1948 = vpow2.f32 %v669_v22  ;;  %v673_v22 = vmul.f32 1.442695, %v592_v7  ;;  %v635_v47 = vsub.f32 %v2778_v49, %v2813_v54  ;;  %v618_v59 = vsub.f32 %v2698_v60, %v2813_v54 }
 0x1b6   : > { %v1939_v35 = vpop.eup %1938  ;;  %1950 = vpow2.f32 %v661_v0  ;;  %v701_v0 = vmul.f32 1.442695, %v606_v1  ;;  %v601_v40 = vsub.f32 %v2660_v32, %v2813_v54  ;;  %v634_v49 = vsub.f32 %v2768_v12, %v2813_v54 }
 0x1b7   : > { %v1941_v19 = vpop.eup %1940  ;;  %1952 = vpow2.f32 %v659_v13  ;;  %v679_v13 = vmul.f32 1.442695, %v595_v17  ;;  %v617_v60 = vsub.f32 %v2700_v63, %v2813_v54  ;;  %v2294_v32 = vmov 0.0  }
 0x1b8   : > { %v1943_v9 = vpop.eup %1942  ;;  %v600_v63 = vsub.f32 %v2662_v33, %v2813_v54  ;;  %v2056_v33 = vld [vmem:[%s2401_s5 + $0x18] sm:$0xff] }
 0x1b9   : > { %919 = vperm.xlu1 %1923, %v1933_v28   ;;  %v1945_v14 = vpop.eup %1944  ;;  %v675_v28 = vmul.f32 1.442695, %v593_v20  ;;  %v594_v20 = vsub.f32 %v3416_v44, %v2813_v54  ;;  %v693_v44 = vmul.f32 1.442695, %v602_v39 }
 0x1ba   : > { %914 = vperm.xlu2 %1924, %v1935_v53   ;;  %v1947_v4 = vpop.eup %1946  ;;  %v689_v2 = vmul.f32 1.442695, %v600_v63 }
 0x1bb   : > { %944 = vperm.xlu0 %1925, %v1937_v18   ;;  %v1949_v53 = vpop.eup %1948  ;;  %v588_v18 = vsub.f32 %v3414_v62, %v2813_v54  ;;  %1954 = vpow2.f32 %v675_v28  ;;  %v677_v28 = vmul.f32 1.442695, %v594_v20  ;;  %v699_v62 = vmul.f32 1.442695, %v605_v42 }
 0x1bc   : > { %v1951_v37 = vpop.eup %1950  ;;  %1956 = vpow2.f32 %v667_v27  ;;  %v759_v20 = vmul.f32 1.442695, %v635_v47 }
 0x1bd   : > { %v665_v52 = vmul.f32 1.442695, %v588_v18  ;;  %v1953_v21 = vpop.eup %1952  ;;  %v765_v18 = vmul.f32 1.442695, %v638_v24  ;;  %v757_v24 = vmul.f32 1.442695, %v634_v49 }
 0x1bf   : > { %1958 = vpow2.f32 %v665_v52  ;;  %v731_v52 = vmul.f32 1.442695, %v621_v61 }
 0x1c1   : > { %929 = vperm.xlu1 %1923, %v1939_v35   ;;  %v1955_v10 = vpop.eup %1954  ;;  %v733_v35 = vmul.f32 1.442695, %v622_v46  ;;  %v697_v46 = vmul.f32 1.442695, %v604_v45  ;;  %v616_v45 = vsub.f32 %v2690_v56, %v2813_v54  ;;  %v632_v56 = vsub.f32 %v2756_v25, %v2813_v54 }
 0x1c2   : > { %924 = vperm.xlu2 %1924, %v1941_v19   ;;  %v671_v19 = vmul.f32 1.442695, %v591_v15 }
 0x1c3   : > { %959 = vperm.xlu0 %1925, %v1943_v9   ;;  %v1957_v9 = vpop.eup %1956  ;;  %1960 = vpow2.f32 %v733_v35 }
 0x1c4   : > { %1962 = vpow2.f32 %v673_v22  ;;  %v695_v22 = vmul.f32 1.442695, %v603_v38  ;;  %v599_v38 = vsub.f32 %v2664_v36, %v2813_v54  ;;  %v2057_v36 = vld [vmem:[%s2401_s5 + $0x28] sm:$0xff] }
 0x1c5   : > { %v1959_v11 = vpop.eup %1958  ;;  %1964 = vpow2.f32 %v671_v19  ;;  %v761_v19 = vmul.f32 1.442695, %v636_v6 }
 0x1c6   : > { %1966 = vpow2.f32 %v701_v0 }
 0x1c7   : > { %1968 = vpow2.f32 %v679_v13  ;;  %v725_v13 = vmul.f32 1.442695, %v618_v59  ;;  %v598_v59 = vsub.f32 %v2654_v29, %v2813_v54 }
 0x1c8   : > { %1970 = vpow2.f32 %v677_v28 }
 0x1c9   : > { %939 = vperm.xlu1 %1923, %v1945_v14   ;;  %v1961_v14 = vpop.eup %1960  ;;  %1972 = vpow2.f32 %v699_v62  ;;  %v723_v62 = vmul.f32 1.442695, %v617_v60 }
 0x1ca   : > { %934 = vperm.xlu2 %1924, %v1947_v4   ;;  %v1963_v4 = vpop.eup %1962  ;;  %1974 = vpow2.f32 %v765_v18  ;;  %v3418_v18 = vld [vmem:[#allocation13_spill] sm:$0xff] }
 0x1cb   : > { %974 = vperm.xlu0 %1925, %v1949_v53   ;;  %v1965_v53 = vpop.eup %1964  ;;  %1976 = vpow2.f32 %v731_v52  ;;  %vm300_vm3 = vcmp.lt.s32.totalorder %v3418_v18, 64 }
 0x1cc   : > { %v1967_v27 = vpop.eup %1966  ;;  %1978 = vpow2.f32 %v697_v46 }
 0x1d1   : > { %954 = vperm.xlu1 %1923, %v1951_v37   ;;  %v1969_v37 = vpop.eup %1968 }
 0x1d2   : > { %949 = vperm.xlu2 %1924, %v1953_v21   ;;  %v1971_v21 = vpop.eup %1970 }
 0x1d3   : > { %989 = vperm.xlu0 %1925, %v1955_v10   ;;  %v763_v10 = vmul.f32 1.442695, %v637_v8  ;;  %v1973_v7 = vpop.eup %1972 }
 0x1d4   : > { %v1975_v15 = vpop.eup %1974 }
 0x1d5   : > { %v1977_v35 = vpop.eup %1976  ;;  %1980 = vpow2.f32 %v763_v10  ;;  %v770_v10 = vmax.f32 %v2056_v33, 0.0 }
 0x1d6   : > { %1982 = vpow2.f32 %v729_v26 }
 0x1d7   : > { %1984 = vpow2.f32 %v695_v22 }
 0x1d8   : > { %1986 = vpow2.f32 %v761_v19  ;;  %v687_v19 = vmul.f32 1.442695, %v599_v38 }
 0x1d9   : > { %969 = vperm.xlu1 %1923, %v1957_v9   ;;  %v1979_v9 = vpop.eup %1978 }
 0x1da   : > { %964 = vperm.xlu2 %1924, %v1959_v11   ;;  %v727_v11 = vmul.f32 1.442695, %v619_v3  ;;  %v615_v3 = vsub.f32 %v2692_v57, %v2813_v54  ;;  %v631_v57 = vsub.f32 %v2742_v55, %v2813_v54 }
 0x1db   : > { %1134 = vperm.xlu0 %1925, %v1961_v14   ;;  %v1981_v1 = vpop.eup %1980 }
 0x1dc   : > { %v1983_v17 = vpop.eup %1982  ;;  %1988 = vpow2.f32 %v727_v11  ;;  %v772_v11 = vmax.f32 %v2057_v36, 0.0  ;;  %v719_v25 = vmul.f32 1.442695, %v615_v3 }
 0x1dd   : > { %v1985_v0 = vpop.eup %1984  ;;  %1990 = vpow2.f32 %v693_v44 }
 0x1de   : > { %v1987_v14 = vpop.eup %1986  ;;  %1992 = vpow2.f32 %v759_v20  ;;  %v614_v20 = vsub.f32 %v2694_v58, %v2813_v54 }
 0x1df   : > { %1994 = vpow2.f32 %v725_v13  ;;  %v2058_v13 = vld [vmem:[%s2401_s5] sm:$0xff] }
 0x1e0   : > { %v717_v60 = vmul.f32 1.442695, %v614_v20 }
 0x1e1   : > { %984 = vperm.xlu1 %1923, %v1963_v4   ;;  %v691_v4 = vmul.f32 1.442695, %v601_v40  ;;  %v751_v40 = vmul.f32 1.442695, %v631_v57 }
 0x1e2   : > { %979 = vperm.xlu2 %1924, %v1965_v53   ;;  %v1989_v28 = vpop.eup %1988  ;;  %v3417_v53 = vld [vmem:[#allocation14_spill] sm:$0xff] }
 0x1e3   : > { %1054 = vperm.xlu0 %1925, %v1967_v27   ;;  %v768_v42 = vmax.f32 %v3417_v53, 0.0  ;;  %v1991_v61 = vpop.eup %1990  ;;  %v2895_v27 = vsel %vm301_vm1, 1.0, %v2294_v32  ;;  %1996 = vpow2.f32 %v691_v4  ;;  %v597_v53 = vsub.f32 %v2656_v30, %v2813_v54 }
 0x1e4   : > { %v1993_v12 = vpop.eup %1992  ;;  %1998 = vpow2.f32 %v757_v24  ;;  %v836_v6 = vsel %vm300_vm3, %v770_v10, %v2895_v27  ;;  %v838_v44 = vsel %vm300_vm3, %v772_v11, %v2895_v27  ;;  %v613_v24 = vsub.f32 %v2684_v50, %v2813_v54 }
 0x1e5   : > { %v1995_v52 = vpop.eup %1994  ;;  %2000 = vpow2.f32 %v723_v62  ;;  %v683_v30 = vmul.f32 1.442695, %v597_v53  ;;  %v629_v50 = vsub.f32 %v2736_v43, %v2813_v54 }
 0x1e6   : > { %2002 = vpow2.f32 %v689_v2 }
 0x1e9   : > { %999 = vperm.xlu1 %1923, %v1969_v37   ;;  %v633_v37 = vsub.f32 %v2762_v23, %v2813_v54  ;;  %v1997_v26 = vpop.eup %1996 }
 0x1ea   : > { %994 = vperm.xlu2 %1924, %v1971_v21   ;;  %v834_v21 = vsel %vm300_vm3, %v768_v42, %v2895_v27  ;;  %v1999_v23 = vpop.eup %1998  ;;  %v630_v42 = vsub.f32 %v2734_v34, %v2813_v54 }
 0x1eb   : > { %1049 = vperm.xlu0 %1925, %v1973_v7   ;;  %v755_v7 = vmul.f32 1.442695, %v633_v37  ;;  %v715_v37 = vmul.f32 1.442695, %v613_v24 }
 0x1ed   : > { %2004 = vpow2.f32 %v755_v7 }
 0x1f1   : > { %1214 = vperm.xlu1 %1923, %v1975_v15   ;;  %v721_v15 = vmul.f32 1.442695, %v616_v45  ;;  %v596_v45 = vsub.f32 %v2658_v31, %v2813_v54 }
 0x1f2   : > { %1129 = vperm.xlu2 %1924, %v1977_v35   ;;  %v2001_v35 = vpop.eup %2000 }
 0x1f3   : > { %1044 = vperm.xlu0 %1925, %v1979_v9   ;;  %2006 = vpow2.f32 %v721_v15  ;;  %v681_v10 = vmul.f32 1.442695, %v596_v45 }
 0x1f4   : > { %2008 = vpow2.f32 %v687_v19 }
 0x1f9   : > { %1209 = vperm.xlu1 %1923, %v1981_v1   ;;  %v753_v1 = vmul.f32 1.442695, %v632_v56  ;;  %v3420_v56 = vld [vmem:[#allocation26_spill] sm:$0xff] }
 0x1fa   : > { %1124 = vperm.xlu2 %1924, %v1983_v17   ;;  %v2003_v17 = vpop.eup %2002 }
 0x1fb   : > { %1039 = vperm.xlu0 %1925, %v1985_v0   ;;  %v2005_v39 = vpop.eup %2004  ;;  %2010 = vpow2.f32 %v753_v1 }
 0x1fc   : > { %v2007_v47 = vpop.eup %2006  ;;  %2012 = vpow2.f32 %v719_v25  ;;  %v2060_v25 = vld [vmem:[%s2401_s5 + $0x78] sm:$0xff] }
 0x1fd   : > { %v2009_v49 = vpop.eup %2008 }
 0x201   : > { %1204 = vperm.xlu1 %1923, %v1987_v14   ;;  %v767_v14 = vmax.f32 %v2058_v13, 0.0  ;;  %v2011_v55 = vpop.eup %2010 }
 0x202   : > { %1119 = vperm.xlu2 %1924, %v1989_v28   ;;  %v685_v28 = vmul.f32 1.442695, %v598_v59  ;;  %v2013_v4 = vpop.eup %2012 }
 0x203   : > { %1034 = vperm.xlu0 %1925, %v1991_v61   ;;  %v833_v58 = vsel %vm300_vm3, %v767_v14, %v2895_v27 }
 0x204   : > { %2014 = vpow2.f32 %v685_v28  ;;  %v3423_v28 = vld [vmem:[#allocation24_spill] sm:$0xff] }
 0x205   : > { %2016 = vpow2.f32 %v751_v40  ;;  %v610_v40 = vsub.f32 %v3423_v28, %v2813_v54  ;;  %v2066_v28 = vld [vmem:[%s2401_s5 + $0x58] sm:$0xff] }
 0x206   : > { %2018 = vpow2.f32 %v717_v60 }
 0x207   : > { %2020 = vpow2.f32 %v683_v30 }
 0x209   : > { %1199 = vperm.xlu1 %1923, %v1993_v12  }
 0x20a   : > { %1114 = vperm.xlu2 %1924, %v1995_v52   ;;  %v749_v52 = vmul.f32 1.442695, %v630_v42  ;;  %v2015_v63 = vpop.eup %2014  ;;  %v2061_v42 = vld [vmem:[%s2401_s5 + $0x98] sm:$0xff] }
 0x20b   : > { %1029 = vperm.xlu0 %1925, %v1997_v26   ;;  %v747_v26 = vmul.f32 1.442695, %v629_v50  ;;  %v786_v24 = vmax.f32 %v2061_v42, 0.0  ;;  %v3424_v50 = vld [vmem:[#allocation29_spill] sm:$0xff]  ;;  %v2067_v42 = vld [vmem:[%s2401_s5 + $0x178] sm:$0xff] }
 0x20c   : > { %v905_v8 = vpop.permute.xlu2 %904  ;;  %2022 = vpow2.f32 %v749_v52 }
 0x20d   : > { %v2906_v46 = vmul.f32 %v905_v8, %v834_v21  ;;  %v2017_v21 = vpop.eup %2016  ;;  %v612_v8 = vsub.f32 %v2686_v51, %v2813_v54  ;;  %2024 = vpow2.f32 %v715_v37  ;;  %v3419_v51 = vld [vmem:[#allocation31_spill] sm:$0xff] }
 0x20e   : > { %v2019_v34 = vpop.eup %2018  ;;  %2026 = vpow2.f32 %v681_v10  ;;  %v628_v38 = vsub.f32 %v3419_v51, %v2813_v54  ;;  %v3425_v10 = vld [vmem:[#allocation25_spill] sm:$0xff] }
 0x20f   : > { %v2021_v31 = vpop.eup %2020  ;;  %v713_v15 = vmul.f32 1.442695, %v612_v8  ;;  %2028 = vpow2.f32 %v747_v26  ;;  %v623_v8 = vsub.f32 %v3424_v50, %v2813_v54  ;;  %v608_v26 = vsub.f32 %v3425_v10, %v2813_v54  ;;  %v2071_v50 = vld [vmem:[%s2401_s5 + $0x168] sm:$0xff] }
 0x210   : > { %v745_v1 = vmul.f32 1.442695, %v628_v38  ;;  %v2063_v38 = vld [vmem:[%s2401_s5 + $0x70] sm:$0xff] }
 0x211   : > { %1194 = vperm.xlu1 %1923, %v1999_v23   ;;  %2030 = vpow2.f32 %v713_v15  ;;  %v3426_v15 = vld [vmem:[#allocation32_spill] sm:$0xff] }
 0x212   : > { %1109 = vperm.xlu2 %1924, %v2001_v35   ;;  %v2023_v23 = vpop.eup %2022  ;;  %v609_v35 = vsub.f32 %v2680_v48, %v2813_v54  ;;  %v2059_v48 = vld [vmem:[%s2401_s5 + $0x80] sm:$0xff] }
 0x213   : > { %1024 = vperm.xlu0 %1925, %v2003_v17   ;;  %v2025_v43 = vpop.eup %2024  ;;  %v783_v11 = vmax.f32 %v2059_v48, 0.0 }
 0x214   : > { %v915_v22 = vpop.permute.xlu2 %914  ;;  %v707_v19 = vmul.f32 1.442695, %v609_v35  ;;  %v2027_v17 = vpop.eup %2026 }
 0x215   : > { %v2918_v9 = vmul.f32 %v915_v22, %v836_v6  ;;  %v611_v6 = vsub.f32 %v3420_v56, %v2813_v54  ;;  %v2029_v59 = vpop.eup %2028  ;;  %v849_v14 = vsel %vm300_vm3, %v783_v11, %v2895_v27  ;;  %v781_v56 = vmax.f32 %v2063_v38, 0.0 }
 0x216   : > { %2032 = vpow2.f32 %v707_v19  ;;  %v705_v11 = vmul.f32 1.442695, %v608_v26 }
 0x217   : > { %v2031_v57 = vpop.eup %2030  ;;  %2034 = vpow2.f32 %v745_v1 }
 0x219   : > { %1189 = vperm.xlu1 %1923, %v2005_v39   ;;  %v782_v39 = vmax.f32 %v2060_v25, 0.0  ;;  %v2064_v25 = vld [vmem:[%s2401_s5 + $0x68] sm:$0xff] }
 0x21a   : > { %1104 = vperm.xlu2 %1924, %v2007_v47   ;;  %v711_v47 = vmul.f32 1.442695, %v611_v6  ;;  %v735_v6 = vmul.f32 1.442695, %v623_v8  ;;  %v812_v8 = vmax.f32 %v2071_v50, 0.0 }
 0x21b   : > { %1019 = vperm.xlu0 %1925, %v2009_v49   ;;  %v848_v60 = vsel %vm300_vm3, %v782_v39, %v2895_v27  ;;  %v780_v39 = vmax.f32 %v2064_v25, 0.0 }
 0x21c   : > { %v925_v0 = vpop.permute.xlu2 %924  ;;  %2036 = vpow2.f32 %v711_v47  ;;  %v2033_v52 = vpop.eup %2032 }
 0x21d   : > { %v2931_v29 = vmul.f32 %v925_v0, %v838_v44  ;;  %v3421_v44 = vld [vmem:[#allocation27_spill] sm:$0xff]  ;;  %v3422_v0 = vld [vmem:[#allocation30_spill] sm:$0xff] }
 0x21e   : > { %v625_v20 = vsub.f32 %v3421_v44, %v2813_v54  ;;  %v627_v13 = vsub.f32 %v3422_v0, %v2813_v54  ;;  %v2065_v44 = vld [vmem:[%s2401_s5 + $0x60] sm:$0xff]  ;;  %v847_v0 = vsel %vm300_vm3, %v781_v56, %v2895_v27 }
 0x221   : > { %1184 = vperm.xlu1 %1923, %v2011_v55  }
 0x222   : > { %1099 = vperm.xlu2 %1924, %v2013_v4   ;;  %v739_v4 = vmul.f32 1.442695, %v625_v20  ;;  %v779_v20 = vmax.f32 %v2065_v44, 0.0  ;;  %v878_v44 = vsel %vm300_vm3, %v812_v8, %v2895_v27 }
 0x223   : > { %v900_v61 = vpop.permute.xlu1 %899  ;;  %1014 = vperm.xlu0 %1925, %v2015_v63   ;;  %v2062_v63 = vld [vmem:[%s2401_s5 + $0x90] sm:$0xff] }
 0x224   : > { %v2942_v62 = vpop.permute.xlu2 %934  ;;  %v2944_v32 = vmul.f32 %v900_v61, %v833_v58  ;;  %v743_v61 = vmul.f32 1.442695, %v627_v13  ;;  %v785_v37 = vmax.f32 %v2062_v63, 0.0  ;;  %2038 = vpow2.f32 %v739_v4  ;;  %v3427_v13 = vld [vmem:[#allocation28_spill] sm:$0xff] }
 0x225   : > { %v2946_v12 = vpop.permute.xlu0 %909  ;;  %v846_v4 = vsel %vm300_vm3, %v780_v39, %v2895_v27 }
 0x226   : > { %2040 = vpow2.f32 %v743_v61 }
 0x229   : > { %1179 = vperm.xlu1 %1923, %v2017_v21   ;;  %v709_v21 = vmul.f32 1.442695, %v610_v40  ;;  %v778_v40 = vmax.f32 %v2066_v28, 0.0 }
 0x22a   : > { %1094 = vperm.xlu2 %1924, %v2019_v34   ;;  %v2035_v34 = vpop.eup %2034 }
 0x22b   : > { %v2954_v2 = vpop.permute.xlu1 %919  ;;  %1009 = vperm.xlu0 %1925, %v2021_v31   ;;  %v2037_v45 = vpop.eup %2036  ;;  %v852_v31 = vsel %vm300_vm3, %v786_v24, %v2895_v27  ;;  %2042 = vpow2.f32 %v709_v21  ;;  %v814_v24 = vmax.f32 %v2067_v42, 0.0 }
 0x22c   : > { %v2956_v33 = vpop.permute.xlu2 %949  ;;  %2044 = vpow2.f32 %v735_v6 }
 0x22d   : > { %v2958_v7 = vpop.permute.xlu0 %944  ;;  %2046 = vpow2.f32 %v705_v11  ;;  %v880_v6 = vsel %vm300_vm3, %v814_v24, %v2895_v27 }
 0x231   : > { %1174 = vperm.xlu1 %1923, %v2023_v23   ;;  %v626_v23 = vsub.f32 %v3426_v15, %v2813_v54  ;;  %v2072_v15 = vld [vmem:[%s2401_s5 + $0x48] sm:$0xff] }
 0x232   : > { %1089 = vperm.xlu2 %1924, %v2025_v43   ;;  %v851_v43 = vsel %vm300_vm3, %v785_v37, %v2895_v27  ;;  %v2069_v37 = vld [vmem:[%s2401_s5 + $0x88] sm:$0xff] }
 0x233   : > { %v2966_v3 = vpop.permute.xlu1 %929  ;;  %1004 = vperm.xlu0 %1925, %v2027_v17   ;;  %v2039_v17 = vpop.eup %2038  ;;  %v741_v47 = vmul.f32 1.442695, %v626_v23  ;;  %v784_v21 = vmax.f32 %v2069_v37, 0.0  ;;  %v776_v23 = vmax.f32 %v2072_v15, 0.0  ;;  %v2080_v15 = vld [vmem:[%s2401_s5 + $0xf0] sm:$0xff] }
 0x234   : > { %v2968_v22 = vpop.permute.xlu2 %964 }
 0x235   : > { %v2970_v36 = vpop.permute.xlu0 %959  ;;  %2048 = vpow2.f32 %v741_v47  ;;  %v1230_v26 = vmul.f32 %v2968_v22, %v846_v4  ;;  %v2073_v22 = vld [vmem:[%s2401_s5 + $0x40] sm:$0xff] }
 0x236   : > { %v775_v11 = vmax.f32 %v2073_v22, 0.0 }
 0x239   : > { %1169 = vperm.xlu1 %1923, %v2029_v59   ;;  %v2041_v59 = vpop.eup %2040 }
 0x23a   : > { %1084 = vperm.xlu2 %1924, %v2031_v57   ;;  %v2043_v57 = vpop.eup %2042 }
 0x23b   : > { %v2983_v49 = vpop.permute.xlu1 %939  ;;  %1069 = vperm.xlu0 %1925, %v2033_v52   ;;  %v2068_v52 = vld [vmem:[%s2401_s5 + $0x50] sm:$0xff] }
 0x23c   : > { %v980_v55 = vpop.permute.xlu2 %979  ;;  %v777_v63 = vmax.f32 %v2068_v52, 0.0 }
 0x23d   : > { %v975_v53 = vpop.permute.xlu0 %974  ;;  %v2988_v58 = vmul.f32 %v980_v55, %v849_v14  ;;  %v624_v14 = vsub.f32 %v3427_v13, %v2813_v54 }
 0x23e   : > { %v1232_v30 = vmul.f32 %v975_v53, %v848_v60  ;;  %v3428_v60 = vld [vmem:[#allocation23_spill] sm:$0xff]  ;;  %v843_v39 = vsel %vm300_vm3, %v777_v63, %v2895_v27 }
 0x23f   : > { %v607_v55 = vsub.f32 %v3428_v60, %v2813_v54  ;;  %v2070_v54 = vld [vmem:[%s2401_s5 + $0x170] sm:$0xff]  ;;  %v737_v10 = vmul.f32 1.442695, %v624_v14 }
 0x240   : > { %1351 = vmatpush.msra.mxu0 %v1232_v30  ;;  %v2075_v14 = vld [vmem:[%s2401_s5 + $0x30] sm:$0xff] }
 0x241   : > { %1164 = vperm.xlu1 %1923, %v2035_v34   ;;  %v845_v34 = vsel %vm300_vm3, %v779_v20, %v2895_v27  ;;  %2050 = vpow2.f32 %v737_v10  ;;  %v570_v20 = vmul.f32 1.442695, %v569_v5  ;;  %v773_v28 = vmax.f32 %v2075_v14, 0.0 }
 0x242   : > { %1079 = vperm.xlu2 %1924, %v2037_v45   ;;  %v813_v45 = vmax.f32 %v2070_v54, 0.0  ;;  %v1229_v56 = vmul.f32 %v2970_v36, %v845_v34  ;;  %v850_v36 = vsel %vm300_vm3, %v784_v21, %v2895_v27  ;;  %v841_v5 = vsel %vm300_vm3, %v775_v11, %v2895_v27  ;;  %v2079_v54 = vld [vmem:[%s2401_s5 + $0x20] sm:$0xff] }
 0x243   : > { %v3004_v35 = vpop.permute.xlu1 %954  ;;  %1149 = vperm.xlu0 %1925, %v2039_v17   ;;  %v2074_v17 = vld [vmem:[%s2401_s5 + $0x38] sm:$0xff]  ;;  %v1225_v21 = vmul.f32 %v2983_v49, %v841_v5  ;;  %v853_v49 = vsel %vm300_vm3, %v787_v41, %v2895_v27 }
 0x244   : > { %v995_v51 = vpop.permute.xlu2 %994  ;;  %v774_v25 = vmax.f32 %v2074_v17, 0.0 }
 0x245   : > { %v990_v19 = vpop.permute.xlu0 %989  ;;  %v3007_v48 = vmul.f32 %v995_v51, %v852_v31  ;;  %v2045_v31 = vpop.eup %2044  ;;  %v844_v51 = vsel %vm300_vm3, %v778_v40, %v2895_v27  ;;  %v2076_v40 = vld [vmem:[%s2401_s5 + $0xf8] sm:$0xff] }
 0x246   : > { %v3009_v1 = vmul.f32 %v990_v19, %v851_v43  ;;  %v703_v43 = vmul.f32 1.442695, %v607_v55  ;;  %v2047_v38 = vpop.eup %2046  ;;  %v1228_v47 = vmul.f32 %v3004_v35, %v844_v51  ;;  %v842_v35 = vsel %vm300_vm3, %v776_v23, %v2895_v27 }
 0x247   : > { %v2049_v19 = vpop.eup %2048  ;;  %v798_v60 = vmax.f32 %v2076_v40, 0.0  ;;  %v1227_v55 = vmul.f32 %v2956_v33, %v843_v39  ;;  %v1226_v63 = vmul.f32 %v2958_v7, %v842_v35  ;;  %v840_v33 = vsel %vm300_vm3, %v774_v25, %v2895_v27  ;;  %v2083_v25 = vld [vmem:[%s2401_s5 + $0x158] sm:$0xff]  ;;  %v2084_v35 = vld [vmem:[%s2401_s5 + $0xe8] sm:$0xff]  ;;  %v2085_v40 = vld [vmem:[%s2401_s5 + $0x1f0] sm:$0xff] }
 0x248   : > { %2052 = vpow2.f32 %v703_v43  ;;  %v2051_v37 = vpop.eup %2050  ;;  %v839_v7 = vsel %vm300_vm3, %v773_v28, %v2895_v27  ;;  %v1224_v50 = vmul.f32 %v2942_v62, %v840_v33  ;;  %v797_v23 = vmax.f32 %v2080_v15, 0.0  ;;  %v2091_v15 = vld [vmem:[%s2401_s5 + $0x1e0] sm:$0xff] }
 0x249   : > { %1159 = vperm.xlu1 %1923, %v2041_v59   ;;  %2054 = vpow2.f32 %v570_v20  ;;  %v1223_v43 = vmul.f32 %v2966_v3, %v839_v7  ;;  %v810_v39 = vmax.f32 %v2083_v25, 0.0  ;;  %v2093_v25 = vld [vmem:[%s2401_s5 + $0xd0] sm:$0xff] }
 0x24a   : > { %1074 = vperm.xlu2 %1924, %v2043_v57   ;;  %v879_v57 = vsel %vm300_vm3, %v813_v45, %v2895_v27  ;;  %v771_v45 = vmax.f32 %v2079_v54, 0.0 }
 0x24b   : > { %v970_v53 = vpop.permute.xlu1 %969  ;;  %1139 = vperm.xlu0 %1925, %v2045_v31  }
 0x24c   : > { %v1130_v61 = vpop.permute.xlu2 %1129  ;;  %v1231_v30 = vmul.f32 %v970_v53, %v847_v0  ;;  %v837_v11 = vsel %vm300_vm3, %v771_v45, %v2895_v27 }
 0x24d   : > { %v1135_v59 = vpop.permute.xlu0 %1134  ;;  %v1263_v42 = vmul.f32 %v1130_v61, %v879_v57  ;;  %v864_v61 = vsel %vm300_vm3, %v798_v60, %v2895_v27  ;;  %v1221_v3 = vmul.f32 %v2954_v2, %v837_v11  ;;  %v876_v2 = vsel %vm300_vm3, %v810_v39, %v2895_v27 }
 0x24e   : > { %1352 = vmatpush.msra.mxu0 %v1231_v30  ;;  %v1264_v0 = vmul.f32 %v1135_v59, %v880_v6  ;;  %v2078_v30 = vld [vmem:[%s2401_s5 + $0x160] sm:$0xff]  ;;  %v2053_v34 = vpop.eup %2052  ;;  %v829_v60 = vmax.f32 %v2085_v40, 0.0  ;;  %v793_v39 = vmax.f32 %v2093_v25, 0.0 }
 0x24f   : > { %v811_v52 = vmax.f32 %v2078_v30, 0.0  ;;  %v2055_v62 = vpop.eup %2054  ;;  %v2087_v30 = vld [vmem:[%s2401_s5 + $0xe0] sm:$0xff] }
 0x250   : > { %1353 = vmatpush.msra.mxu0 %v1230_v26  ;;  %1433 = vmatpush.msra.mxu2 %v1264_v0  ;;  %v796_v0 = vmax.f32 %v2084_v35, 0.0 }
 0x251   : > { %1064 = vperm.xlu1 %1923, %v2047_v38   ;;  %v877_v10 = vsel %vm300_vm3, %v811_v52, %v2895_v27  ;;  %v795_v52 = vmax.f32 %v2087_v30, 0.0 }
 0x252   : > { %1154 = vperm.xlu2 %1924, %v2049_v19   ;;  %1354 = vmatpush.msra.mxu0 %v1229_v56  ;;  %v2081_v56 = vld [vmem:[%s2401_s5 + $0x10] sm:$0xff]  ;;  %v2082_v19 = vld [vmem:[%s2401_s5 + $0x1f8] sm:$0xff]  ;;  %v862_v41 = vsel %vm300_vm3, %v796_v0, %v2895_v27 }
 0x253   : > { %v985_v13 = vpop.permute.xlu1 %984  ;;  %1434 = vmatpush.msra.mxu2 %v1263_v42  ;;  %v769_v6 = vmax.f32 %v2081_v56, 0.0  ;;  %v830_v22 = vmax.f32 %v2082_v19, 0.0 }
 0x254   : > { %v1125_v4 = vpop.permute.xlu2 %1124  ;;  %v3065_v53 = vmul.f32 %v985_v13, %v850_v36  ;;  %1355 = vmatpush.msra.mxu0 %v1228_v47  ;;  %v863_v36 = vsel %vm300_vm3, %v797_v23, %v2895_v27  ;;  %v1338_v47 = vperm.slane %v2055_v62, 0  ;;  %v827_v23 = vmax.f32 %v2091_v15, 0.0 }
 0x255   : > { %v1262_v24 = vmul.f32 %v1125_v4, %v878_v44  ;;  %v1055_v8 = vpop.permute.xlu0 %1054  ;;  %v835_v59 = vsel %vm300_vm3, %v769_v6, %v2895_v27  ;;  %v896_v57 = vsel %vm300_vm3, %v830_v22, %v2895_v27  ;;  %v2086_v4 = vld [vmem:[%s2401_s5 + $0x150] sm:$0xff] }
 0x256   : > { %1356 = vmatpush.msra.mxu0 %v1227_v55  ;;  %v1248_v26 = vmul.f32 %v1055_v8, %v864_v61  ;;  %v1219_v13 = vmul.f32 %v2946_v12, %v835_v59  ;;  %v809_v16 = vmax.f32 %v2086_v4, 0.0  ;;  %v2089_v61 = vld [vmem:[%s2401_s5 + $0x148] sm:$0xff]  ;;  %v2090_v8 = vld [vmem:[%s2401_s5 + $0xd8] sm:$0xff]  ;;  %v893_v6 = vsel %vm300_vm3, %v827_v23, %v2895_v27  ;;  %v2097_v4 = vld [vmem:[%s2401_s5 + $0x1d0] sm:$0xff] }
 0x257   : > { %1435 = vmatpush.msra.mxu2 %v1262_v24 }
 0x258   : > { %1357 = vmatpush.msra.mxu0 %v1226_v63  ;;  %1392 = vmatpush.msra.mxu1 %v1248_v26  ;;  %v875_v5 = vsel %vm300_vm3, %v809_v16, %v2895_v27  ;;  %v825_v16 = vmax.f32 %v2097_v4, 0.0 }
 0x259   : > { %1144 = vperm.xlu1 %1923, %v2051_v37   ;;  %v2088_v37 = vld [vmem:[%s2401_s5 + $0x1e8] sm:$0xff] }
 0x25a   : > { %1059 = vperm.xlu2 %1924, %v2053_v34   ;;  %1358 = vmatpush.msra.mxu0 %v1225_v21  ;;  %v808_v34 = vmax.f32 %v2089_v61, 0.0  ;;  %v2100_v61 = vld [vmem:[%s2401_s5 + $0x1c8] sm:$0xff] }
 0x25b   : > { %v1000_v31 = vpop.permute.xlu1 %999 }
 0x25c   : > { %v1120_v51 = vpop.permute.xlu2 %1119  ;;  %v3093_v38 = vmul.f32 %v1000_v31, %v853_v49  ;;  %1359 = vmatpush.msra.mxu0 %v1224_v50  ;;  %v874_v7 = vsel %vm300_vm3, %v808_v34, %v2895_v27  ;;  %v824_v34 = vmax.f32 %v2100_v61, 0.0 }
 0x25d   : > { %v1261_v17 = vmul.f32 %v1120_v51, %v877_v10  ;;  %v1050_v44 = vpop.permute.xlu0 %1049  ;;  %v794_v10 = vmax.f32 %v2090_v8, 0.0  ;;  %v2092_v51 = vld [vmem:[%s2401_s5 + $0x140] sm:$0xff] }
 0x25e   : > { %1360 = vmatpush.msra.mxu0 %v1223_v43  ;;  %v1247_v20 = vmul.f32 %v1050_v44, %v863_v36  ;;  %v807_v62 = vmax.f32 %v2092_v51, 0.0  ;;  %v2095_v44 = vld [vmem:[%s2401_s5 + $0x138] sm:$0xff]  ;;  %v2103_v51 = vld [vmem:[%s2401_s5 + $0x1c0] sm:$0xff] }
 0x25f   : > { %1436 = vmatpush.msra.mxu2 %v1261_v17  ;;  %v860_v56 = vsel %vm300_vm3, %v794_v10, %v2895_v27 }
 0x260   : > { %1361 = vmatpush.msra.mxu0 %v2931_v29  ;;  %1393 = vmatpush.msra.mxu1 %v1247_v20  ;;  %v873_v22 = vsel %vm300_vm3, %v807_v62, %v2895_v27  ;;  %v859_v20 = vsel %vm300_vm3, %v793_v39, %v2895_v27  ;;  %v823_v62 = vmax.f32 %v2103_v51, 0.0  ;;  %v1283_v51 = vld [vmem:[%s2407_s3 + $0x10] sm:$0xff] }
 0x262   : > { %1340 = vperm.xlu2 %1924, %v1338_v47   ;;  %1362 = vmatpush.msra.mxu0 %v1221_v3  ;;  %v2094_v47 = vld [vmem:[%s2401_s5 + $0x1d8] sm:$0xff] }
 0x263   : > { %v1215_v29 = vpop.permute.xlu1 %1214  ;;  %v826_v59 = vmax.f32 %v2094_v47, 0.0 }
 0x264   : > { %v1115_v14 = vpop.permute.xlu2 %1114  ;;  %1363 = vmatpush.msra.mxu0 %v2918_v9  ;;  %v1280_v28 = vmul.f32 %v1215_v29, %v896_v57  ;;  %v895_v9 = vsel %vm300_vm3, %v829_v60, %v2895_v27 }
 0x265   : > { %v1260_v55 = vmul.f32 %v1115_v14, %v876_v2  ;;  %v1045_v12 = vpop.permute.xlu0 %1044  ;;  %v806_v2 = vmax.f32 %v2095_v44, 0.0  ;;  %v892_v29 = vsel %vm300_vm3, %v826_v59, %v2895_v27  ;;  %v2106_v44 = vld [vmem:[%s2401_s5 + $0x1b8] sm:$0xff] }
 0x266   : > { %1364 = vmatpush.msra.mxu0 %v1219_v13  ;;  %1474 = vmatpush.msra.mxu3 %v1280_v28  ;;  %v1246_v42 = vmul.f32 %v1045_v12, %v862_v41  ;;  %v2096_v28 = vld [vmem:[%s2401_s5 + $0xc8] sm:$0xff] }
 0x267   : > { %1437 = vmatpush.msra.mxu2 %v1260_v55  ;;  %v872_v0 = vsel %vm300_vm3, %v806_v2, %v2895_v27  ;;  %v792_v40 = vmax.f32 %v2096_v28, 0.0  ;;  %v822_v2 = vmax.f32 %v2106_v44, 0.0 }
 0x268   : > { %1365 = vmatpush.msra.mxu0 %v2906_v46  ;;  %v828_v46 = vmax.f32 %v2088_v37, 0.0  ;;  %1394 = vmatpush.msra.mxu1 %v1246_v42  ;;  %v891_v42 = vsel %vm300_vm3, %v825_v16, %v2895_v27 }
 0x26a   : > { %1366 = vmatpush.msra.mxu0 %v2944_v32  ;;  %v861_v32 = vsel %vm300_vm3, %v795_v52, %v2895_v27  ;;  %v894_v54 = vsel %vm300_vm3, %v828_v46, %v2895_v27 }
 0x26b   : > { %v1210_v24 = vpop.permute.xlu1 %1209 }
 0x26c   : > { %v1110_v63 = vpop.permute.xlu2 %1109  ;;  %v1279_v33 = vmul.f32 %v1210_v24, %v895_v9  ;;  %v2098_v9 = vld [vmem:[%s2401_s5 + $0x130] sm:$0xff] }
 0x26d   : > { %v1259_v21 = vmul.f32 %v1110_v63, %v875_v5  ;;  %v1040_v45 = vpop.permute.xlu0 %1039  ;;  %v805_v12 = vmax.f32 %v2098_v9, 0.0  ;;  %v858_v5 = vsel %vm300_vm3, %v792_v40, %v2895_v27  ;;  %v2109_v9 = vld [vmem:[%s2401_s5 + $0x1b0] sm:$0xff] }
 0x26e   : > { %1475 = vmatpush.msra.mxu3 %v1279_v33  ;;  %v1245_v49 = vmul.f32 %v1040_v45, %v861_v32  ;;  %v2099_v33 = vld [vmem:[%s2401_s5 + $0xc0] sm:$0xff] }
 0x26f   : > { %1438 = vmatpush.msra.mxu2 %v1259_v21  ;;  %v871_v30 = vsel %vm300_vm3, %v805_v12, %v2895_v27  ;;  %v791_v37 = vmax.f32 %v2099_v33, 0.0  ;;  %v821_v12 = vmax.f32 %v2109_v9, 0.0  ;;  %v2110_v33 = vld [vmem:[%s2401_s5 + $0x110] sm:$0xff] }
 0x270   : > { %1395 = vmatpush.msra.mxu1 %v1245_v49  ;;  %v890_v49 = vsel %vm300_vm3, %v824_v34, %v2895_v27 }
 0x273   : > { %v1205_v50 = vpop.permute.xlu1 %1204 }
 0x274   : > { %v1105_v26 = vpop.permute.xlu2 %1104  ;;  %v1278_v31 = vmul.f32 %v1205_v50, %v894_v54  ;;  %v2101_v54 = vld [vmem:[%s2401_s5 + $0x128] sm:$0xff] }
 0x275   : > { %v1258_v43 = vmul.f32 %v1105_v26, %v874_v7  ;;  %v1035_v19 = vpop.permute.xlu0 %1034  ;;  %v804_v45 = vmax.f32 %v2101_v54, 0.0  ;;  %v857_v7 = vsel %vm300_vm3, %v791_v37, %v2895_v27  ;;  %v801_v37 = vmax.f32 %v2110_v33, 0.0  ;;  %v1281_v54 = vld [vmem:[%s2407_s3] sm:$0xff] }
 0x276   : > { %1476 = vmatpush.msra.mxu3 %v1278_v31  ;;  %v1244_v11 = vmul.f32 %v1035_v19, %v860_v56  ;;  %v2102_v31 = vld [vmem:[%s2401_s5 + $0xb8] sm:$0xff] }
 0x277   : > { %1439 = vmatpush.msra.mxu2 %v1258_v43  ;;  %v870_v8 = vsel %vm300_vm3, %v804_v45, %v2895_v27  ;;  %v790_v15 = vmax.f32 %v2102_v31, 0.0  ;;  %v867_v34 = vsel %vm300_vm3, %v801_v37, %v2895_v27  ;;  %v1289_v37 = vld [vmem:[%s2407_s3 + $0x40] sm:$0xff] }
 0x278   : > { %1396 = vmatpush.msra.mxu1 %v1244_v11  ;;  %v889_v11 = vsel %vm300_vm3, %v823_v62, %v2895_v27  ;;  %v1301_v62 = vunpack.c.l.bf16 %v1283_v51  ;;  %v1313_v18 = vunpack.c.l.bf16 %v1289_v37 }
 0x27b   : > { %v1200_v17 = vpop.permute.xlu1 %1199 }
 0x27c   : > { %v1100_v3 = vpop.permute.xlu2 %1099  ;;  %v1277_v36 = vmul.f32 %v1200_v17, %v893_v6  ;;  %v2104_v6 = vld [vmem:[%s2401_s5 + $0x120] sm:$0xff] }
 0x27d   : > { %v1257_v57 = vmul.f32 %v1100_v3, %v873_v22  ;;  %v1030_v35 = vpop.permute.xlu0 %1029  ;;  %v803_v19 = vmax.f32 %v2104_v6, 0.0  ;;  %v856_v22 = vsel %vm300_vm3, %v790_v15, %v2895_v27  ;;  %v2114_v15 = vld [vmem:[%s2401_s5 + $0x190] sm:$0xff] }
 0x27e   : > { %1477 = vmatpush.msra.mxu3 %v1277_v36  ;;  %v1243_v13 = vmul.f32 %v1030_v35, %v859_v20  ;;  %v2105_v36 = vld [vmem:[%s2401_s5 + $0xb0] sm:$0xff] }
 0x27f   : > { %1440 = vmatpush.msra.mxu2 %v1257_v57  ;;  %v869_v25 = vsel %vm300_vm3, %v803_v19, %v2895_v27  ;;  %v789_v47 = vmax.f32 %v2105_v36, 0.0  ;;  %v2115_v19 = vld [vmem:[%s2401_s5 + $0x108] sm:$0xff] }
 0x280   : > { %1397 = vmatpush.msra.mxu1 %v1243_v13  ;;  %v888_v13 = vsel %vm300_vm3, %v822_v2, %v2895_v27 }
 0x283   : > { %v1195_v14 = vpop.permute.xlu1 %1194 }
 0x284   : > { %v1095_v60 = vpop.permute.xlu2 %1094  ;;  %v1276_v55 = vmul.f32 %v1195_v14, %v892_v29  ;;  %v2107_v29 = vld [vmem:[%s2401_s5 + $0x118] sm:$0xff] }
 0x285   : > { %v1256_v41 = vmul.f32 %v1095_v60, %v872_v0  ;;  %v1025_v24 = vpop.permute.xlu0 %1024  ;;  %v802_v35 = vmax.f32 %v2107_v29, 0.0  ;;  %v855_v0 = vsel %vm300_vm3, %v789_v47, %v2895_v27 }
 0x286   : > { %1478 = vmatpush.msra.mxu3 %v1276_v55  ;;  %v1242_v52 = vmul.f32 %v1025_v24, %v858_v5  ;;  %v2108_v55 = vld [vmem:[%s2401_s5 + $0xa8] sm:$0xff]  ;;  %v887_v24 = vsel %vm300_vm3, %v821_v12, %v2895_v27 }
 0x287   : > { %1441 = vmatpush.msra.mxu2 %v1256_v41  ;;  %v868_v28 = vsel %vm300_vm3, %v802_v35, %v2895_v27  ;;  %v788_v4 = vmax.f32 %v2108_v55, 0.0 }
 0x288   : > { %1398 = vmatpush.msra.mxu1 %v1242_v52 }
 0x28b   : > { %v1190_v63 = vpop.permute.xlu1 %1189 }
 0x28c   : > { %v1090_v46 = vpop.permute.xlu2 %1089  ;;  %v1275_v21 = vmul.f32 %v1190_v63, %v891_v42  ;;  %v854_v42 = vsel %vm300_vm3, %v788_v4, %v2895_v27 }
 0x28d   : > { %v1255_v32 = vmul.f32 %v1090_v46, %v871_v30  ;;  %v1020_v50 = vpop.permute.xlu0 %1019 }
 0x28e   : > { %1479 = vmatpush.msra.mxu3 %v1275_v21  ;;  %v1241_v10 = vmul.f32 %v1020_v50, %v857_v7  ;;  %v2111_v21 = vld [vmem:[%s2401_s5 + $0x1a8] sm:$0xff]  ;;  %v1297_v7 = vunpack.c.l.bf16 %v1281_v54 }
 0x28f   : > { %1442 = vmatpush.msra.mxu2 %v1255_v32  ;;  %v820_v61 = vmax.f32 %v2111_v21, 0.0 }
 0x290   : > { %1399 = vmatpush.msra.mxu1 %v1241_v10  ;;  %1367 = vmatmul.f32.vlgmr.msra.gmra.mxu0 %v1297_v7  ;;  %v2112_v10 = vld [vmem:[%s2401_s5 + $0x1a0] sm:$0xff] }
 0x291   : > { %v886_v32 = vsel %vm300_vm3, %v820_v61, %v2895_v27 }
 0x293   : > { %v1185_v26 = vpop.permute.xlu1 %1184 }
 0x294   : > { %v1085_v23 = vpop.permute.xlu2 %1084  ;;  %v1274_v43 = vmul.f32 %v1185_v26, %v890_v49  ;;  %v819_v26 = vmax.f32 %v2112_v10, 0.0 }
 0x295   : > { %v1254_v56 = vmul.f32 %v1085_v23, %v870_v8  ;;  %v1015_v17 = vpop.permute.xlu0 %1014  ;;  %v1298_v8 = vunpack.c.h.bf16 %v1281_v54  ;;  %v817_v23 = vmax.f32 %v2114_v15, 0.0  ;;  %v1292_v15 = vld [vmem:[%s2407_s3 + $0x58] sm:$0xff] }
 0x296   : > { %1480 = vmatpush.msra.mxu3 %v1274_v43  ;;  %v1240_v39 = vmul.f32 %v1015_v17, %v856_v22  ;;  %v885_v43 = vsel %vm300_vm3, %v819_v26, %v2895_v27  ;;  %v800_v22 = vmax.f32 %v2115_v19, 0.0 }
 0x297   : > { %1443 = vmatpush.msra.mxu2 %v1254_v56 }
 0x298   : > { %1400 = vmatpush.msra.mxu1 %v1240_v39  ;;  %1370 = vmatmul.f32.gmra.mxu0 %v1301_v62  ;;  %v2116_v39 = vld [vmem:[%s2401_s5 + $0x100] sm:$0xff]  ;;  %v866_v47 = vsel %vm300_vm3, %v800_v22, %v2895_v27  ;;  %v1294_v62 = vld [vmem:[%s2407_s3 + $0x68] sm:$0xff] }
 0x29b   : > { %v1180_v3 = vpop.permute.xlu1 %1179 }
 0x29c   : > { %v1080_v59 = vpop.permute.xlu2 %1079  ;;  %v1273_v57 = vmul.f32 %v1180_v3, %v889_v11  ;;  %v883_v11 = vsel %vm300_vm3, %v817_v23, %v2895_v27  ;;  %v799_v3 = vmax.f32 %v2116_v39, 0.0 }
 0x29d   : > { %v1253_v20 = vmul.f32 %v1080_v59, %v869_v25  ;;  %v1010_v14 = vpop.permute.xlu0 %1009  ;;  %v1285_v59 = vld [vmem:[%s2407_s3 + $0x20] sm:$0xff] }
 0x29e   : > { %1481 = vmatpush.msra.mxu3 %v1273_v57  ;;  %v1239_v40 = vmul.f32 %v1010_v14, %v855_v0  ;;  %v1282_v57 = vld [vmem:[%s2407_s3 + $0x8] sm:$0xff]  ;;  %v1305_v44 = vunpack.c.l.bf16 %v1285_v59  ;;  %v865_v2 = vsel %vm300_vm3, %v799_v3, %v2895_v27  ;;  %v1306_v0 = vunpack.c.h.bf16 %v1285_v59 }
 0x29f   : > { %1444 = vmatpush.msra.mxu2 %v1253_v20 }
 0x2a0   : > { %1401 = vmatpush.msra.mxu1 %v1239_v40  ;;  %1373 = vmatmul.f32.gmra.mxu0 %v1305_v44 }
 0x2a3   : > { %v1175_v60 = vpop.permute.xlu1 %1174 }
 0x2a4   : > { %v1075_v16 = vpop.permute.xlu2 %1074  ;;  %v1272_v41 = vmul.f32 %v1175_v60, %v888_v13  ;;  %v2117_v13 = vld [vmem:[%s2401_s5 + $0x188] sm:$0xff]  ;;  %v2118_v60 = vld [vmem:[%s2401_s5 + $0x180] sm:$0xff] }
 0x2a5   : > { %v1252_v5 = vmul.f32 %v1075_v16, %v868_v28  ;;  %v1005_v30 = vpop.permute.xlu0 %1004  ;;  %v816_v14 = vmax.f32 %v2117_v13, 0.0  ;;  %v1299_v28 = vunpack.c.l.bf16 %v1282_v57  ;;  %v815_v55 = vmax.f32 %v2118_v60, 0.0  ;;  %v1287_v16 = vld [vmem:[%s2407_s3 + $0x30] sm:$0xff] }
 0x2a6   : > { %1482 = vmatpush.msra.mxu3 %v1272_v41  ;;  %v1238_v52 = vmul.f32 %v1005_v30, %v854_v42  ;;  %v1284_v41 = vld [vmem:[%s2407_s3 + $0x18] sm:$0xff]  ;;  %v1309_v9 = vunpack.c.l.bf16 %v1287_v16  ;;  %v1310_v30 = vunpack.c.h.bf16 %v1287_v16 }
 0x2a7   : > { %1445 = vmatpush.msra.mxu2 %v1252_v5  ;;  %v882_v4 = vsel %vm300_vm3, %v816_v14, %v2895_v27  ;;  %v881_v12 = vsel %vm300_vm3, %v815_v55, %v2895_v27  ;;  %v1304_v21 = vunpack.c.h.bf16 %v1284_v41  ;;  %v1330_v55 = vld [vmem:[#allocation2] sm:$0xff] }
 0x2a8   : > { %1402 = vmatpush.msra.mxu1 %v1238_v52  ;;  %1376 = vmatmul.f32.gmra.mxu0 %v1309_v9  ;;  %v1300_v52 = vunpack.c.h.bf16 %v1282_v57 }
 0x2aa   : > { %1403 = vmatpush.msra.mxu1 %v3093_v38 }
 0x2ab   : > { %v1170_v63 = vpop.permute.xlu1 %1169 }
 0x2ac   : > { %v1271_v46 = vmul.f32 %v1170_v63, %v887_v24  ;;  %1404 = vmatpush.msra.mxu1 %v3007_v48  ;;  %v2113_v48 = vld [vmem:[%s2401_s5 + $0x198] sm:$0xff]  ;;  %v1303_v63 = vunpack.c.l.bf16 %v1284_v41 }
 0x2ad   : > { %v1070_v45 = vpop.permute.xlu0 %1069  ;;  %v818_v31 = vmax.f32 %v2113_v48, 0.0 }
 0x2ae   : > { %1483 = vmatpush.msra.mxu3 %v1271_v46  ;;  %v1251_v49 = vmul.f32 %v1070_v45, %v867_v34  ;;  %1405 = vmatpush.msra.mxu1 %v3009_v1  ;;  %v1155_v1 = vpop.permute.xlu2 %1154  ;;  %v1286_v46 = vld [vmem:[%s2407_s3 + $0x28] sm:$0xff]  ;;  %v1291_v34 = vld [vmem:[%s2407_s3 + $0x50] sm:$0xff] }
 0x2af   : > { %v1307_v61 = vunpack.c.l.bf16 %v1286_v46  ;;  %v1317_v54 = vunpack.c.l.bf16 %v1291_v34  ;;  %v1318_v45 = vunpack.c.h.bf16 %v1291_v34  ;;  %v1308_v7 = vunpack.c.h.bf16 %v1286_v46 }
 0x2b0   : > { %1406 = vmatpush.msra.mxu1 %v3065_v53  ;;  %1446 = vmatpush.msra.mxu2 %v1251_v49  ;;  %v884_v53 = vsel %vm300_vm3, %v818_v31, %v2895_v27  ;;  %v1314_v27 = vunpack.c.h.bf16 %v1289_v37  ;;  %v1295_v31 = vld [vmem:[%s2407_s3 + $0x70] sm:$0xff] }
 0x2b1   : > { %v1268_v25 = vmul.f32 %v1155_v1, %v884_v53  ;;  %1379 = vmatmul.f32.gmra.mxu0 %v1313_v18  ;;  %v1325_v23 = vunpack.c.l.bf16 %v1295_v31  ;;  %v1326_v1 = vunpack.c.h.bf16 %v1295_v31  ;;  %v1320_v53 = vunpack.c.h.bf16 %v1292_v15 }
 0x2b2   : > { %1407 = vmatpush.msra.mxu1 %v2988_v58  ;;  %v1302_v58 = vunpack.c.h.bf16 %v1283_v51  ;;  %v1319_v51 = vunpack.c.l.bf16 %v1292_v15 }
 0x2b3   : > { %v1165_v50 = vpop.permute.xlu1 %1164  ;;  %1408 = vmatmul.f32.vlgmr.msra.gmra.mxu1 %v1298_v8 }
 0x2b4   : > { %v1270_v38 = vmul.f32 %v1165_v50, %v886_v32  ;;  %v1288_v32 = vld [vmem:[%s2407_s3 + $0x38] sm:$0xff]  ;;  %v1293_v50 = vld [vmem:[%s2407_s3 + $0x60] sm:$0xff] }
 0x2b5   : > { %v1150_v17 = vpop.permute.xlu0 %1149  ;;  %v1311_v49 = vunpack.c.l.bf16 %v1288_v32  ;;  %v1321_v8 = vunpack.c.l.bf16 %v1293_v50  ;;  %v1322_v10 = vunpack.c.h.bf16 %v1293_v50  ;;  %v1312_v26 = vunpack.c.h.bf16 %v1288_v32 }
 0x2b6   : > { %1484 = vmatpush.msra.mxu3 %v1270_v38  ;;  %v1267_v36 = vmul.f32 %v1150_v17, %v883_v11  ;;  %v1060_v20 = vpop.permute.xlu2 %1059  ;;  %v1290_v38 = vld [vmem:[%s2407_s3 + $0x48] sm:$0xff] }
 0x2b7   : > { %v1249_v40 = vmul.f32 %v1060_v20, %v865_v2  ;;  %v1315_v48 = vunpack.c.l.bf16 %v1290_v38  ;;  %v1329_v2 = vld [vmem:[#allocation2 + $0x30] sm:$0xff] }
 0x2b9   : > { %1382 = vmatmul.f32.gmra.mxu0 %v1317_v54 }
 0x2bb   : > { %v1160_v56 = vpop.permute.xlu1 %1159  ;;  %1411 = vmatmul.f32.gmra.mxu1 %v1302_v58  ;;  %v1324_v58 = vunpack.c.h.bf16 %v1294_v62 }
 0x2bc   : > { %v1269_v6 = vmul.f32 %v1160_v56, %v885_v43  ;;  %v1316_v43 = vunpack.c.h.bf16 %v1290_v38  ;;  %v1323_v56 = vunpack.c.l.bf16 %v1294_v62 }
 0x2bd   : > { %v1140_v5 = vpop.permute.xlu0 %1139 }
 0x2be   : > { %1485 = vmatpush.msra.mxu3 %v1269_v6  ;;  %v1265_v33 = vmul.f32 %v1140_v5, %v881_v12  ;;  %v1296_v6 = vld [vmem:[%s2407_s3 + $0x78] sm:$0xff]  ;;  %v3280_v44 = vpop.permute.xlu2 %1340 }
 0x2bf   : > { %v1327_v19 = vunpack.c.l.bf16 %v1296_v6  ;;  %v1328_v22 = vunpack.c.h.bf16 %v1296_v6  ;;  %v1344_v41 = vmul.f32 %v3280_v44, %v1330_v55 }
 0x2c0   : > { %1486 = vmatpush.msra.mxu3 %v1268_v25 }
 0x2c1   : > { %1385 = vmatmul.f32.gmra.mxu0 %v1321_v8 }
 0x2c2   : > { %1487 = vmatpush.msra.mxu3 %v1267_v36 }
 0x2c3   : > { %v1065_v29 = vpop.permute.xlu1 %1064  ;;  %1414 = vmatmul.f32.gmra.mxu1 %v1306_v0 }
 0x2c4   : > { %v1250_v35 = vmul.f32 %v1065_v29, %v866_v47 }
 0x2c6   : > { %1447 = vmatpush.msra.mxu2 %v1250_v35  ;;  %v1343_v35 = vmul.f32 %v3280_v44, %v1329_v2 }
 0x2c8   : > { %1448 = vmatpush.msra.mxu2 %v1249_v40 }
 0x2c9   : > { %1449 = vmatmul.f32.vlgmr.msra.gmra.mxu2 %v1299_v28  ;;  %1388 = vmatmul.f32.gmra.mxu0 %v1325_v23 }
 0x2cb   : > { %v1145_v42 = vpop.permute.xlu1 %1144  ;;  %1417 = vmatmul.f32.gmra.mxu1 %v1310_v30 }
 0x2cc   : > { %v1266_v24 = vmul.f32 %v1145_v42, %v882_v4 }
 0x2ce   : > { %1488 = vmatpush.msra.mxu3 %v1266_v24  ;;  %v1331_v24 = vld [vmem:[#allocation2 + $0x18] sm:$0xff] }
 0x2cf   : > { %v1345_v37 = vmul.f32 %v3280_v44, %v1331_v24 }
 0x2d0   : > { %1489 = vmatpush.msra.mxu3 %v1265_v33 }
 0x2d1   : > { %1490 = vmatmul.f32.vlgmr.msra.gmra.mxu3 %v1300_v52  ;;  %1452 = vmatmul.f32.gmra.mxu2 %v1303_v63 }
 0x2d3   : > { %1420 = vmatmul.f32.gmra.mxu1 %v1314_v27 }
 0x2d9   : > { %1493 = vmatmul.f32.gmra.mxu3 %v1304_v21  ;;  %1455 = vmatmul.f32.gmra.mxu2 %v1307_v61  ;;  %v1332_v61 = vld [vmem:[#allocation2 + $0x10] sm:$0xff] }
 0x2da   : > { %v1346_v54 = vmul.f32 %v3280_v44, %v1332_v61 }
 0x2db   : > { %1423 = vmatmul.f32.gmra.mxu1 %v1318_v45 }
 0x2e1   : > { %1496 = vmatmul.f32.gmra.mxu3 %v1308_v7  ;;  %1458 = vmatmul.f32.gmra.mxu2 %v1311_v49 }
 0x2e3   : > { %1426 = vmatmul.f32.gmra.mxu1 %v1322_v10  ;;  %v1333_v10 = vld [vmem:[#allocation2 + $0x8] sm:$0xff] }
 0x2e4   : > { %v1347_v31 = vmul.f32 %v3280_v44, %v1333_v10 }
 0x2e9   : > { %1499 = vmatmul.f32.gmra.mxu3 %v1312_v26  ;;  %1461 = vmatmul.f32.gmra.mxu2 %v1315_v48 }
 0x2eb   : > { %1429 = vmatmul.f32.gmra.mxu1 %v1326_v1 }
 0x2f1   : > { %1502 = vmatmul.f32.gmra.mxu3 %v1316_v43  ;;  %1464 = vmatmul.f32.gmra.mxu2 %v1319_v51 }
 0x2f9   : > { %1505 = vmatmul.f32.gmra.mxu3 %v1320_v53  ;;  %1467 = vmatmul.f32.gmra.mxu2 %v1323_v56  ;;  %v1334_v53 = vld [vmem:[#allocation2 + $0x20] sm:$0xff] }
 0x301   : > { %1508 = vmatmul.f32.gmra.mxu3 %v1324_v58  ;;  %1470 = vmatmul.f32.gmra.mxu2 %v1327_v19  ;;  %v1348_v58 = vmul.f32 %v3280_v44, %v1334_v53 }
 0x309   : > { %1511 = vmatmul.f32.gmra.mxu3 %v1328_v22 }
 0x30d   : > { %v1368_v11 = vpop.f32.mrf.mxu0 }
 0x315   : > { %v1371_v25 = vpop.f32.mrf.mxu0 }
 0x31d   : > { %v1374_v47 = vpop.f32.mrf.mxu0 }
 0x325   : > { %v1377_v40 = vpop.f32.mrf.mxu0 }
 0x32e   : > { %v1380_v30 = vpop.f32.mrf.mxu0 }
 0x330   : > { %v1409_v17 = vpop.f32.mrf.mxu1 }
 0x331   : > { %v1410_v36 = vadd.f32 %v1409_v17, %v1368_v11 }
 0x336   : > { %v1383_v49 = vpop.f32.mrf.mxu0 }
 0x338   : > { %v1412_v39 = vpop.f32.mrf.mxu1 }
 0x339   : > { %v1413_v13 = vadd.f32 %v1412_v39, %v1371_v25  ;;  %v1335_v25 = vld [vmem:[#allocation2 + $0x28] sm:$0xff] }
 0x33e   : > { %v1386_v43 = vpop.f32.mrf.mxu0 }
 0x340   : > { %v1415_v59 = vpop.f32.mrf.mxu1 }
 0x341   : > { %v1416_v12 = vadd.f32 %v1415_v59, %v1374_v47  ;;  %v1349_v47 = vmul.f32 %v3280_v44, %v1335_v25 }
 0x346   : > { %v1389_v39 = vpop.f32.mrf.mxu0 }
 0x348   : > { %v1418_v60 = vpop.f32.mrf.mxu1 }
 0x349   : > { %v1419_v18 = vadd.f32 %v1418_v60, %v1377_v40 }
 0x34c   : > { %v1450_v3 = vpop.f32.mrf.mxu2 }
 0x34d   : > { %v1451_v57 = vadd.f32 %v1450_v3, %v1410_v36 }
 0x350   : > { %v1421_v52 = vpop.f32.mrf.mxu1 }
 0x351   : > { %v1422_v7 = vadd.f32 %v1421_v52, %v1380_v30 }
 0x354   : > { %v1491_v20 = vpop.f32.mrf.mxu3  ;;  %v1453_v29 = vpop.f32.mrf.mxu2 }
 0x355   : > { %v1492_v0 = vadd.f32 %v1491_v20, %v1451_v57  ;;  %v1454_v28 = vadd.f32 %v1453_v29, %v1413_v13 }
 0x357   : > { %v1515_v14 = vadd.f32 %v1492_v0, %v1343_v35  ;;  %v1336_v35 = vld [vmem:[#allocation2 + $0x38] sm:$0xff] }
 0x358   : > { %v1424_v50 = vpop.f32.mrf.mxu1  ;;  %v1350_v13 = vmul.f32 %v3280_v44, %v1336_v35 }
 0x359   : > { %1523 = vst [vmem:[#allocation2 + $0x30] sm:$0xff] %v1515_v14  ;;  %v1425_v23 = vadd.f32 %v1424_v50, %v1383_v49 }
 0x35c   : > { %v1494_v4 = vpop.f32.mrf.mxu3  ;;  %v1456_v16 = vpop.f32.mrf.mxu2 }
 0x35d   : > { %v1495_v9 = vadd.f32 %v1494_v4, %v1454_v28  ;;  %v1457_v42 = vadd.f32 %v1456_v16, %v1416_v12 }
 0x35f   : > { %v1516_v5 = vadd.f32 %v1495_v9, %v1344_v41 }
 0x360   : > { %v1427_v51 = vpop.f32.mrf.mxu1 }
 0x361   : > { %1524 = vst [vmem:[#allocation2] sm:$0xff] %v1516_v5  ;;  %v1428_v22 = vadd.f32 %v1427_v51, %v1386_v43 }
 0x364   : > { %v1497_v63 = vpop.f32.mrf.mxu3  ;;  %v1459_v33 = vpop.f32.mrf.mxu2 }
 0x365   : > { %v1498_v46 = vadd.f32 %v1497_v63, %v1457_v42  ;;  %v1460_v21 = vadd.f32 %v1459_v33, %v1419_v18 }
 0x367   : > { %v1517_v27 = vadd.f32 %v1498_v46, %v1345_v37 }
 0x368   : > { %v1430_v3 = vpop.f32.mrf.mxu1 }
 0x369   : > { %1525 = vst [vmem:[#allocation2 + $0x18] sm:$0xff] %v1517_v27  ;;  %v1431_v57 = vadd.f32 %v1430_v3, %v1389_v39 }
 0x36c   : > { %v1500_v34 = vpop.f32.mrf.mxu3  ;;  %v1462_v32 = vpop.f32.mrf.mxu2 }
 0x36d   : > { %v1501_v45 = vadd.f32 %v1500_v34, %v1460_v21  ;;  %v1463_v8 = vadd.f32 %v1462_v32, %v1422_v7 }
 0x36f   : > { %v1518_v38 = vadd.f32 %v1501_v45, %v1346_v54 }
 0x371   : > { %1526 = vst [vmem:[#allocation2 + $0x10] sm:$0xff] %v1518_v38 }
 0x374   : > { %v1503_v26 = vpop.f32.mrf.mxu3  ;;  %v1465_v48 = vpop.f32.mrf.mxu2 }
 0x375   : > { %v1504_v15 = vadd.f32 %v1503_v26, %v1463_v8  ;;  %v1466_v62 = vadd.f32 %v1465_v48, %v1425_v23 }
 0x377   : > { %v1519_v1 = vadd.f32 %v1504_v15, %v1347_v31 }
 0x379   : > { %1527 = vst [vmem:[#allocation2 + $0x8] sm:$0xff] %v1519_v1 }
 0x37c   : > { %v1506_v56 = vpop.f32.mrf.mxu3  ;;  %v1468_v6 = vpop.f32.mrf.mxu2 }
 0x37d   : > { %v1507_v19 = vadd.f32 %v1506_v56, %v1466_v62  ;;  %v1469_v17 = vadd.f32 %v1468_v6, %v1428_v22 }
 0x37f   : > { %v1520_v11 = vadd.f32 %v1507_v19, %v1348_v58 }
 0x381   : > { %1528 = vst [vmem:[#allocation2 + $0x20] sm:$0xff] %v1520_v11 }
 0x384   : > { %v1509_v36 = vpop.f32.mrf.mxu3  ;;  %v1471_v2 = vpop.f32.mrf.mxu2 }
 0x385   : > { %v1510_v59 = vadd.f32 %v1509_v36, %v1469_v17  ;;  %v1472_v29 = vadd.f32 %v1471_v2, %v1431_v57 }
 0x387   : > { %v1521_v20 = vadd.f32 %v1510_v59, %v1349_v47 }
 0x389   : > { %1529 = vst [vmem:[#allocation2 + $0x28] sm:$0xff] %v1521_v20 }
 0x38c   : > { %v1512_v0 = vpop.f32.mrf.mxu3 }
 0x38d   : > { %v1513_v14 = vadd.f32 %v1512_v0, %v1472_v29  ;;  %1534 = sbr.rel (%p1835_p0) target bundleno = 1069 (0x42d), region = 44 }
 0x38f   : > { %v1522_v28 = vadd.f32 %v1513_v14, %v1350_v13 }
 0x391   : > { %1530 = vst [vmem:[#allocation2 + $0x38] sm:$0xff] %v1522_v28 }
 0x392   : > { %v3291_v40 = vld [vmem:[#allocation2 + $0x18] sm:$0xff]  ;;  %v3293_v60 = vld [vmem:[#allocation2 + $0x30] sm:$0xff]  ;;  %v2295_v55 = vmov 64   ;;  %v1539_v41 = vld [vmem:[#allocation2 + $0x8] sm:$0xff]  ;;  %vm1711_vm8 = vcmask 523264  }
 0x393   : > { %2120 = vset.pattern.permute.xlu1 %v2295_v55  ;;  %2119 = vset.pattern.permute.xlu0 %v2295_v55  ;;  %v1545_v4 = vadd.f32 1e-06, %v3291_v40  ;;  %v1543_v16 = vadd.f32 1e-06, %v3293_v60  ;;  %v1547_v44 = vadd.f32 1e-06, %v1539_v41 }
 0x394   : > { %2121 = vset.pattern.permute.xlu2 %v2295_v55  ;;  %v3297_v9 = vld [vmem:[#allocation2 + $0x10] sm:$0xff]  ;;  %v3299_v12 = vld [vmem:[#allocation2] sm:$0xff]  ;;  %v3305_v63 = vld [vmem:[#allocation2 + $0x28] sm:$0xff] }
 0x395   : > { %1563 = vperm.xlu1 %2120, %v1545_v4   ;;  %1553 = vperm.xlu0 %2119, %v1543_v16   ;;  %v1540_v5 = vld [vmem:[#allocation2 + $0x20] sm:$0xff]  ;;  %v1546_v42 = vadd.f32 1e-06, %v3297_v9  ;;  %v1544_v24 = vadd.f32 1e-06, %v3299_v12 }
 0x396   : > { %1573 = vperm.xlu2 %2121, %v1547_v44   ;;  %v1548_v30 = vadd.f32 1e-06, %v1540_v5  ;;  %v1549_v37 = vadd.f32 1e-06, %v3305_v63 }
 0x398   : > { %v3303_v52 = vld [vmem:[#allocation2 + $0x38] sm:$0xff] }
 0x399   : > { %v1550_v33 = vadd.f32 1e-06, %v3303_v52 }
 0x39d   : > { %1568 = vperm.xlu1 %2120, %v1546_v42   ;;  %1558 = vperm.xlu0 %2119, %v1544_v24  }
 0x39e   : > { %1578 = vperm.xlu2 %2121, %v1548_v30  }
 0x3a5   : > { %1588 = vperm.xlu1 %2120, %v1550_v33   ;;  %1583 = vperm.xlu0 %2119, %v1549_v37  }
 0x3f0   : > { %v1574_v46 = vpop.permute.xlu2 %1573 }
 0x3f1   : > { %2122 = vrcp.f32 %v1574_v46  ;;  %v1662_v61 = vand.u32 2147483648, %v1574_v46  ;;  %vm1656_vm4 = vweird.f32 %v1574_v46  ;;  %v1660_v32 = vand.u32 2147483647, %v1574_v46 }
 0x3f3   : > { %v1663_v45 = vor.u32 1.1754944e-38, %v1662_v61  ;;  %vm1661_vm7 = vcmp.eq.f32.partialorder %v1660_v32, 8.507059e+37 }
 0x3f7   : > { %v2123_v18 = vpop.eup %2122 }
 0x3f8   : > { %v1652_v27 = vmul.f32 %v2123_v18, %v1574_v46  ;;  %v1579_v21 = vpop.permute.xlu2 %1578  ;;  %vm1657_vm5 = vweird.f32 %v2123_v18 }
 0x3f9   : > { %2124 = vrcp.f32 %v1579_v21  ;;  %vm1658_vm6 = vmor %vm1656_vm4, %vm1657_vm5  ;;  %vm1671_vm9 = vweird.f32 %v1579_v21  ;;  %v1677_v10 = vand.u32 2147483648, %v1579_v21  ;;  %v1675_v31 = vand.u32 2147483647, %v1579_v21 }
 0x3fa   : > { %v1653_v34 = vsub.f32 1.0, %v1652_v27 }
 0x3fb   : > { %v1678_v23 = vor.u32 1.1754944e-38, %v1677_v10  ;;  %vm1676_vm12 = vcmp.eq.f32.partialorder %v1675_v31, 8.507059e+37 }
 0x3fc   : > { %v1654_v54 = vmul.f32 %v2123_v18, %v1653_v34 }
 0x3fe   : > { %v1655_v7 = vadd.f32 %v2123_v18, %v1654_v54 }
 0x3ff   : > { %v2125_v49 = vpop.eup %2124 }
 0x400   : > { %v1659_v50 = vsel %vm1658_vm6, %v2123_v18, %v1655_v7  ;;  %v1667_v38 = vmul.f32 %v2125_v49, %v1579_v21  ;;  %vm1672_vm10 = vweird.f32 %v2125_v49 }
 0x401   : > { %v1664_v8 = vsel %vm1661_vm7, %v1663_v45, %v1659_v50  ;;  %vm1673_vm11 = vmor %vm1671_vm9, %vm1672_vm10 }
 0x402   : > { %v1665_v26 = vmul.f32 %v1664_v8, %v1539_v41  ;;  %v1668_v48 = vsub.f32 1.0, %v1667_v38 }
 0x404   : > { %1716 = vst.msk [vmem:[#allocation9 + $0x20] sm:$0xff] %vm1711_vm8, %v1665_v26  ;;  %v1669_v15 = vmul.f32 %v2125_v49, %v1668_v48 }
 0x406   : > { %v1670_v1 = vadd.f32 %v2125_v49, %v1669_v15 }
 0x407   : > { %v1564_v43 = vpop.permute.xlu1 %1563  ;;  %v1554_v51 = vpop.permute.xlu0 %1553 }
 0x408   : > { %2126 = vrcp.f32 %v1564_v43  ;;  %v1674_v62 = vsel %vm1673_vm11, %v2125_v49, %v1670_v1  ;;  %v1632_v39 = vand.u32 2147483648, %v1564_v43  ;;  %v1630_v47 = vand.u32 2147483647, %v1564_v43 }
 0x409   : > { %2128 = vrcp.f32 %v1554_v51  ;;  %v1679_v53 = vsel %vm1676_vm12, %v1678_v23, %v1674_v62  ;;  %v1602_v59 = vand.u32 2147483648, %v1554_v51  ;;  %v1600_v2 = vand.u32 2147483647, %v1554_v51 }
 0x40a   : > { %v1680_v56 = vmul.f32 %v1679_v53, %v1540_v5  ;;  %vm1626_vm15 = vweird.f32 %v1564_v43  ;;  %v1633_v35 = vor.u32 1.1754944e-38, %v1632_v39  ;;  %vm1596_vm1 = vweird.f32 %v1554_v51 }
 0x40b   : > { %vm1631_vm2 = vcmp.eq.f32.partialorder %v1630_v47, 8.507059e+37  ;;  %v1603_v28 = vor.u32 1.1754944e-38, %v1602_v59  ;;  %vm1601_vm4 = vcmp.eq.f32.partialorder %v1600_v2, 8.507059e+37 }
 0x40c   : > { %1717 = vst.msk [vmem:[#allocation9 + $0x28] sm:$0xff] %vm1711_vm8, %v1680_v56 }
 0x40e   : > { %v2127_v6 = vpop.eup %2126 }
 0x40f   : > { %v2129_v58 = vpop.eup %2128  ;;  %v1622_v19 = vmul.f32 %v2127_v6, %v1564_v43  ;;  %v1569_v22 = vpop.permute.xlu1 %1568  ;;  %vm1627_vm13 = vweird.f32 %v2127_v6 }
 0x410   : > { %v3311_v11 = vpop.permute.xlu0 %1558  ;;  %v1592_v17 = vmul.f32 %v2129_v58, %v1554_v51  ;;  %2130 = vrcp.f32 %v1569_v22  ;;  %vm1597_vm14 = vweird.f32 %v2129_v58  ;;  %vm1628_vm0 = vmor %vm1626_vm15, %vm1627_vm13  ;;  %v1645_v37 = vand.u32 2147483647, %v1569_v22 }
 0x411   : > { %v1623_v25 = vsub.f32 1.0, %v1622_v19  ;;  %2132 = vrcp.f32 %v3311_v11  ;;  %vm1598_vm3 = vmor %vm1596_vm1, %vm1597_vm14  ;;  %v1647_v46 = vand.u32 2147483648, %v1569_v22  ;;  %v1617_v21 = vand.u32 2147483648, %v3311_v11 }
 0x412   : > { %v1593_v3 = vsub.f32 1.0, %v1592_v17  ;;  %vm1641_vm7 = vweird.f32 %v1569_v22  ;;  %vm1611_vm10 = vweird.f32 %v3311_v11  ;;  %vm1646_vm11 = vcmp.eq.f32.partialorder %v1645_v37, 8.507059e+37 }
 0x413   : > { %v1624_v36 = vmul.f32 %v2127_v6, %v1623_v25  ;;  %v1618_v7 = vor.u32 1.1754944e-38, %v1617_v21 }
 0x414   : > { %v1594_v57 = vmul.f32 %v2129_v58, %v1593_v3 }
 0x415   : > { %v1625_v20 = vadd.f32 %v2127_v6, %v1624_v36 }
 0x416   : > { %v2131_v29 = vpop.eup %2130  ;;  %v1595_v0 = vadd.f32 %v2129_v58, %v1594_v57 }
 0x417   : > { %v2133_v13 = vpop.eup %2132  ;;  %v1629_v14 = vsel %vm1628_vm0, %v2127_v6, %v1625_v20  ;;  %v1637_v55 = vmul.f32 %v2131_v29, %v1569_v22  ;;  %v1589_v4 = vpop.permute.xlu1 %1588  ;;  %vm1642_vm5 = vweird.f32 %v2131_v29 }
 0x418   : > { %v1634_v16 = vsel %vm1631_vm2, %v1633_v35, %v1629_v14  ;;  %v1599_v41 = vsel %vm1598_vm3, %v2129_v58, %v1595_v0  ;;  %v1607_v44 = vmul.f32 %v2133_v13, %v3311_v11  ;;  %v3315_v5 = vpop.permute.xlu0 %1583  ;;  %2134 = vrcp.f32 %v1589_v4  ;;  %vm1643_vm9 = vmor %vm1641_vm7, %vm1642_vm5 }
 0x419   : > { %v1635_v42 = vmul.f32 %v1634_v16, %v3291_v40  ;;  %v1604_v24 = vsel %vm1601_vm4, %v1603_v28, %v1599_v41  ;;  %v1638_v30 = vsub.f32 1.0, %v1637_v55  ;;  %2136 = vrcp.f32 %v3315_v5 }
 0x41a   : > { %v1605_v33 = vmul.f32 %v1604_v24, %v3293_v60  ;;  %v1608_v18 = vsub.f32 1.0, %v1607_v44  ;;  %vm1612_vm6 = vweird.f32 %v2133_v13  ;;  %v1615_v40 = vand.u32 2147483647, %v3311_v11 }
 0x41b   : > { %1714 = vst.msk [vmem:[#allocation9 + $0x10] sm:$0xff] %vm1711_vm8, %v1635_v42  ;;  %v1639_v27 = vmul.f32 %v2131_v29, %v1638_v30  ;;  %v1648_v60 = vor.u32 1.1754944e-38, %v1647_v46  ;;  %vm1613_vm12 = vmor %vm1611_vm10, %vm1612_vm6  ;;  %v1707_v23 = vand.u32 2147483648, %v1589_v4  ;;  %v1705_v43 = vand.u32 2147483647, %v1589_v4 }
 0x41c   : > { %1712 = vst.msk [vmem:[#allocation9] sm:$0xff] %vm1711_vm8, %v1605_v33  ;;  %v1609_v61 = vmul.f32 %v2133_v13, %v1608_v18  ;;  %vm1616_vm13 = vcmp.eq.f32.partialorder %v1615_v40, 8.507059e+37  ;;  %vm1701_vm15 = vweird.f32 %v1589_v4  ;;  %v1692_v62 = vand.u32 2147483648, %v3315_v5 }
 0x41d   : > { %v1640_v34 = vadd.f32 %v2131_v29, %v1639_v27  ;;  %v1708_v56 = vor.u32 1.1754944e-38, %v1707_v23  ;;  %vm1706_vm2 = vcmp.eq.f32.partialorder %v1705_v43, 8.507059e+37  ;;  %vm1686_vm3 = vweird.f32 %v3315_v5 }
 0x41e   : > { %v1610_v32 = vadd.f32 %v2133_v13, %v1609_v61  ;;  %v2135_v54 = vpop.eup %2134  ;;  %v1693_v22 = vor.u32 1.1754944e-38, %v1692_v62 }
 0x41f   : > { %v1644_v45 = vsel %vm1643_vm9, %v2131_v29, %v1640_v34  ;;  %v1697_v38 = vmul.f32 %v2135_v54, %v1589_v4  ;;  %v2137_v8 = vpop.eup %2136  ;;  %vm1702_vm14 = vweird.f32 %v2135_v54 }
 0x420   : > { %v1649_v49 = vsel %vm1646_vm11, %v1648_v60, %v1644_v45  ;;  %v1614_v50 = vsel %vm1613_vm12, %v2133_v13, %v1610_v32  ;;  %v1682_v15 = vmul.f32 %v2137_v8, %v3315_v5  ;;  %vm1687_vm0 = vweird.f32 %v2137_v8  ;;  %vm1703_vm1 = vmor %vm1701_vm15, %vm1702_vm14 }
 0x421   : > { %v1650_v10 = vmul.f32 %v1649_v49, %v3297_v9  ;;  %v1619_v26 = vsel %vm1616_vm13, %v1618_v7, %v1614_v50  ;;  %v1698_v31 = vsub.f32 1.0, %v1697_v38  ;;  %vm1688_vm4 = vmor %vm1686_vm3, %vm1687_vm0 }
 0x422   : > { %v1620_v48 = vmul.f32 %v1619_v26, %v3299_v12  ;;  %v1683_v51 = vsub.f32 1.0, %v1682_v15  ;;  %v1690_v12 = vand.u32 2147483647, %v3315_v5 }
 0x423   : > { %1715 = vst.msk [vmem:[#allocation9 + $0x18] sm:$0xff] %vm1711_vm8, %v1650_v10  ;;  %v1699_v1 = vmul.f32 %v2135_v54, %v1698_v31 }
 0x424   : > { %1713 = vst.msk [vmem:[#allocation9 + $0x8] sm:$0xff] %vm1711_vm8, %v1620_v48  ;;  %v1684_v9 = vmul.f32 %v2137_v8, %v1683_v51  ;;  %vm1691_vm5 = vcmp.eq.f32.partialorder %v1690_v12, 8.507059e+37 }
 0x425   : > { %v1700_v53 = vadd.f32 %v2135_v54, %v1699_v1 }
 0x426   : > { %v1685_v58 = vadd.f32 %v2137_v8, %v1684_v9 }
 0x427   : > { %v1704_v6 = vsel %vm1703_vm1, %v2135_v54, %v1700_v53 }
 0x428   : > { %v1709_v19 = vsel %vm1706_vm2, %v1708_v56, %v1704_v6  ;;  %v1689_v17 = vsel %vm1688_vm4, %v2137_v8, %v1685_v58 }
 0x429   : > { %v1710_v11 = vmul.f32 %v1709_v19, %v3303_v52  ;;  %v1694_v25 = vsel %vm1691_vm5, %v1693_v22, %v1689_v17 }
 0x42a   : > { %v1695_v39 = vmul.f32 %v1694_v25, %v3305_v63 }
 0x42b   : > { %1719 = vst.msk [vmem:[#allocation9 + $0x38] sm:$0xff] %vm1711_vm8, %v1710_v11 }
 0x42c   : > { %1718 = vst.msk [vmem:[#allocation9 + $0x30] sm:$0xff] %vm1711_vm8, %v1695_v39 }
 0x42d PF: > { %s3429_s12 = sadd.s32 4294967295, %s2284_s14   ;;  %s1730_s8 = sshll.u32 %s3362_s2, 4  ;;  %s1731_s8 = int_to_ptr.hbm [resolvable:$true] %s1730_s8 }
 0x42e   : > { %p1860_p1 = scmp.eq.s32.totalorder %s3429_s12, 1  ;;  %s2296_s9 = smov [#allocation9]  }
 0x42f   : > { %s1728_s17 = sshll.u32 %s2296_s9, 4  ;;  %s2297_s18 = smov 128   ;;  %s1729_s17 = int_to_ptr.vmem [resolvable:$true] %s1728_s17 }
 0x430   : > { %s2298_s19 = smov 8  }
 0x431   : > { %1849 = dma.vmem_to_hbm [thread:$0]  (%p1860_p1), %s1729_s17, 1024, %s1731_s8, [#allocation6], %s2297_s18, %s2297_s18, %s2298_s19  }
 0x432   : > { %2259 = dma.done.wait (%p1860_p1), [#allocation6], 1024  }
 0x433   : > { %2261 = vsyncadd (%p1860_p1), [#allocation6], 4294966272 }
 0x434 PF: > { %s19_s14 = sadd.s32 1, %s2284_s14   ;;  %s3430_s9 = smov %s2268_s10 }
 0x435   : > { %p16_p2 = scmp.ge.s32.totalorder %s19_s14, 4   ;;  %s3431_s10 = smov %s2272_s11 }
 0x436   : > { %s3432_s11 = smov %s2365_s21  ;;  %s3433_s12 = smov %s2280_s13 }
 0x437   : > { %s3434_s13 = smov %s3436_s16  ;;  %18 = sbr.rel (!%p16_p2) target bundleno = 7 (0x7), region = 87 }
 0x43c   :  { %1747 = vsyncpa [#allocation5], 1 }
 0x43d   :  { %1749 = vsyncpa [#allocation5 + $0x1], 1 }
 0x43e   :  { %1750 = vsyncpa [#allocation8], 1 }
 0x43f   :  { %1752 = vsyncpa [#allocation8 + $0x1], 1 }
 0x440   :  { %1753 = vsyncpa [#allocation6], 1 }
 0x441   :  { %1755 = vsyncpa [#allocation6 + $0x1], 1 }

</bundles_post_ra>
